<compile_context>
chip_gen: v5e
topology: v5e:2x2
jax: 0.10.0
libtpu: 0.0.40
codegen_flags: <defaults>
</compile_context>

<pallas_src>
import functools

import jax
import jax.numpy as jnp
import numpy as np
from jax import lax
from jax.experimental import pallas as pl
from jax.experimental.pallas import tpu as pltpu


def _round_up(x, m):
    return (x + m - 1) // m * m


def _cdiv(a, b):
    return -(-a // b)


def _conv3d_bn_relu_kernel(x_hbm, w_ref, shift_ref, o_ref,
                           xbuf, rhs, sem, *,
                           kd_sz, khw_shifts, d_tile, d_span, cin_p, l_pad):
    """One (batch, Dout-tile) block of fused conv3d + BN + ReLU.

    x_hbm:     (N, Din_p, Cin_p, L_pad)   full input, left in HBM (pl.ANY);
                                          the depth-halo slab is DMA'd manually.
    w_ref:     (Cout, K)                  BN-scale-folded weights,
                                          K = kD*kH*kW*Cin_p, [kd][kh][kw][cin].
    shift_ref: (Cout, 1)                  folded conv-bias + BN shift (f32).
    o_ref:     (1, Cout, d_tile*L_pad)    lane-dense output tile.
    xbuf:      (2, d_span, Cin_p, L_pad)  double-buffered input depth slabs.
    rhs:       (K, d_tile*L_pad)          rolled-tap matmul RHS (VMEM scratch).
    sem:       (2,) DMA semaphores.
    """
    n = pl.program_id(0)
    dt = pl.program_id(1)
    num_dt = pl.num_programs(1)
    slot = dt % 2

    def start_fetch(tile_idx, slot_idx):
        d0 = tile_idx * d_tile
        pltpu.make_async_copy(x_hbm.at[n, pl.ds(d0, d_span)],
                              xbuf.at[slot_idx], sem.at[slot_idx]).start()

    # First depth tile of this batch element: nothing in flight yet.
    @pl.when(dt == 0)
    def _():
        start_fetch(0, 0)

    # Wait for this tile's slab (issued just above at dt==0, else prefetched at dt-1).
    pltpu.make_async_copy(x_hbm.at[n, pl.ds(dt * d_tile, d_span)],
                          xbuf.at[slot], sem.at[slot]).wait()

    # Prefetch the next depth tile of this batch element into the other slot.
    @pl.when(dt + 1 < num_dt)
    def _():
        start_fetch(dt + 1, 1 - slot)

    # Build the (K, d_tile*L_pad) RHS: sublane block (kd*kHkW + t)*cin_p holds the
    # input depth (dl + kd) lane-rolled by khw_shifts[t]; lane block dl holds
    # output depth d0+dl.  Each rolled slab is computed once and stored at every
    # (kd, dl) position that consumes it (stores are tile-aligned, unmasked).
    khw = len(khw_shifts)
    for dd in range(d_span):
        xs = xbuf[slot, dd]                                    # (cin_p, l_pad)
        for t, s in enumerate(khw_shifts):
            r = xs if s == 0 else jnp.roll(xs, -s, axis=-1)    # XLU lane roll
            for k in range(kd_sz):
                dl = dd - k
                if 0 <= dl < d_tile:
                    row = (k * khw + t) * cin_p
                    rhs[row:row + cin_p, dl * l_pad:(dl + 1) * l_pad] = r

    # One wide MXU matmul: (Cout, K) x (K, d_tile*L_pad); folded BN shift + ReLU.
    acc = jnp.dot(w_ref[...], rhs[...], preferred_element_type=jnp.float32)
    y = jnp.maximum(acc + shift_ref[...], 0.0)
    o_ref[0] = y.astype(o_ref.dtype)


def _pick_vmem_limit(block_bytes):
    """Block-footprint-derived VMEM limit, capped at 90% of physical VMEM."""
    try:
        cap = int(pltpu.get_tpu_info().vmem_capacity_bytes)
    except Exception:
        cap = 64 * 1024 * 1024            # conservative default (v7x per-core)
    want = max(32 * 1024 * 1024, int(block_bytes * 1.5) + (4 << 20))
    return min(want, int(cap * 0.9))


def conv3d_bn_relu(x_ncdhw, weight_oidhw, bias, gamma, beta,
                   running_mean, running_var, eps=1e-5,
                   d_tile_max=8, compute_dtype=None):
    """Pallas conv3d_bn_relu.forward (eval-mode BN, stride=1, pad=0, groups=1).

    x_ncdhw:      (N, Cin, D, H, W)         -- PyTorch layout
    weight_oidhw: (Cout, Cin, kD, kH, kW)   -- PyTorch Conv3d weight layout
    compute_dtype: dtype of the matmul operands (weights + rolled input slabs).
                   jnp.bfloat16 is the throughput lever on v6e/v7x; defaults to
                   the input dtype (f32 here) for tight numerics.
    Returns:      (N, Cout, Dout, Hout, Wout)
    """
    N, Cin, Din, Hin, Win = x_ncdhw.shape
    Cout, _, kD, kH, kW = weight_oidhw.shape
    Dout, Hout, Wout = Din - kD + 1, Hin - kH + 1, Win - kW + 1
    out_dtype = x_ncdhw.dtype
    cdt = jnp.dtype(out_dtype if compute_dtype is None else compute_dtype)
    itemsize = cdt.itemsize
    out_itemsize = jnp.dtype(out_dtype).itemsize

    cin_p = _round_up(Cin, 16 if itemsize == 2 else 8)   # sublane-dense channels
    l_real = Hin * Win
    l_pad = _round_up(l_real, 128)                       # lane-dense flattened H*W
    K = kD * kH * kW * cin_p

    # ---- depth tile: as big as the VMEM budget allows (few grid steps, wide
    # matmul N); Dout need not be divisible — depth is padded and cropped.
    bytes_per_out_depth = (K * l_pad * itemsize               # RHS column block
                           + 2 * cin_p * l_pad * itemsize     # dbl-buffered input slab
                           + 2 * Cout * l_pad * out_itemsize)  # dbl-buffered output
    d_cap = max(1, (24 << 20) // bytes_per_out_depth)
    d_max = max(1, min(d_tile_max, d_cap, Dout))
    num_dt = _cdiv(Dout, d_max)
    d_tile = _cdiv(Dout, num_dt)
    dout_p = d_tile * num_dt                # >= Dout; excess depths cropped below
    d_span = d_tile + kD - 1
    din_p = dout_p + kD - 1                 # >= Din

    # ---- fold eval-mode BN into the conv weights / bias ----------------------
    scale = gamma / jnp.sqrt(running_var + eps)                     # (Cout,)
    shift = ((bias - running_mean) * scale + beta).astype(jnp.float32)

    # ---- input: NCDHW -> (N, Din_p, Cin_p, L_pad) ----------------------------
    x = x_ncdhw.astype(cdt).reshape(N, Cin, Din, l_real)
    x = jnp.transpose(x, (0, 2, 1, 3))                              # (N, Din, Cin, L)
    x = jnp.pad(x, ((0, 0), (0, din_p - Din), (0, cin_p - Cin), (0, l_pad - l_real)))

    # ---- weights: (Cout,Cin,kD,kH,kW) -> (Cout, kD*kH*kW*Cin_p), BN-scaled ---
    w = weight_oidhw * scale[:, None, None, None, None]
    w = jnp.pad(w, ((0, 0), (0, cin_p - Cin), (0, 0), (0, 0), (0, 0)))
    w = jnp.transpose(w, (0, 2, 3, 4, 1))                           # (Cout,kD,kH,kW,Cin_p)
    w = w.reshape(Cout, K).astype(cdt)

    khw_shifts = tuple(kh * Win + kw for kh in range(kH) for kw in range(kW))

    kernel = functools.partial(
        _conv3d_bn_relu_kernel,
        kd_sz=kD, khw_shifts=khw_shifts, d_tile=d_tile, d_span=d_span,
        cin_p=cin_p, l_pad=l_pad)

    block_bytes = (2 * d_span * cin_p * l_pad * itemsize        # xbuf
                   + K * d_tile * l_pad * itemsize              # rhs scratch
                   + 2 * Cout * K * itemsize                    # weight block
                   + 2 * Cout * d_tile * l_pad * out_itemsize   # output block
                   + 2 * Cout * 4)                              # shift block
    cost = pl.CostEstimate(
        flops=2 * N * Cout * Dout * Hout * Wout * Cin * kD * kH * kW,
        transcendentals=0,
        bytes_accessed=(x.size * itemsize + w.size * itemsize
                        + N * Cout * dout_p * l_pad * out_itemsize))

    # Megacore split lands on the batch axis (its input slabs differ per core);
    # the depth-tile axis must stay sequential for the double-buffered halo DMA.
    # TODO(synk): when N == 1, split Cout across cores instead of the dt axis.
    out = pl.pallas_call(
        kernel,
        out_shape=jax.ShapeDtypeStruct((N, Cout, dout_p * l_pad), out_dtype),
        grid_spec=pltpu.PrefetchScalarGridSpec(
            num_scalar_prefetch=0,
            grid=(N, num_dt),
            in_specs=[
                pl.BlockSpec(memory_space=pl.ANY),                # input stays in HBM
                pl.BlockSpec((Cout, K), lambda n, dt: (0, 0)),
                pl.BlockSpec((Cout, 1), lambda n, dt: (0, 0)),
            ],
            out_specs=pl.BlockSpec((1, Cout, d_tile * l_pad),
                                   lambda n, dt: (n, 0, dt)),
            scratch_shapes=[
                pltpu.VMEM((2, d_span, cin_p, l_pad), cdt),       # halo slabs (x2)
                pltpu.VMEM((K, d_tile * l_pad), cdt),             # rolled-tap RHS
                pltpu.SemaphoreType.DMA((2,)),
            ]),
        compiler_params=pltpu.CompilerParams(
            dimension_semantics=("parallel", "arbitrary"),
            vmem_limit_bytes=_pick_vmem_limit(block_bytes),
        ),
        cost_estimate=cost,
    )(x, w, shift.reshape(Cout, 1))

    # Drop padded depths/lanes and the invalid (h >= Hout, w >= Wout) columns.
    # TODO(synk): for very large H*W the flattened-H*W lane axis should also be
    #             tiled (with a lane halo); here it is assumed to fit one block.
    out = out.reshape(N, Cout, dout_p, l_pad)[:, :, :Dout, :l_real]
    out = out.reshape(N, Cout, Dout, Hin, Win)[:, :, :, :Hout, :Wout]
    return out


def _reference(x_ncdhw, weight_oidhw, bias, gamma, beta,
               running_mean, running_var, eps=1e-5):
    """Pure-JAX reference (mirrors PyTorch Conv3d + eval BatchNorm3d + ReLU)."""
    x = jnp.transpose(x_ncdhw, (0, 2, 3, 4, 1))
    w = jnp.transpose(weight_oidhw, (2, 3, 4, 1, 0))
    y = lax.conv_general_dilated(
        x, w, window_strides=(1, 1, 1), padding="VALID",
        dimension_numbers=("NDHWC", "DHWIO", "NDHWC"))
    y = y + bias
    scale = gamma / jnp.sqrt(running_var + eps)
    shift = beta - running_mean * scale
    y = y * scale + shift
    y = jnp.maximum(y, 0.0)
    return jnp.transpose(y, (0, 4, 1, 2, 3))


if __name__ == "__main__":
    # Small deterministic config: in_channel=4, out_channel=8, kszie=3,
    # stride=1, pad=0, has_bn=True, has_relu=True, bias=True, groups=1.
    N, Cin, Cout = 2, 4, 8
    D = H = W = 8
    kD = kH = kW = 3

    key = jax.random.PRNGKey(0)
    kx, kw_, kb, kg, kbe, km, kv = jax.random.split(key, 7)

    x = jax.random.normal(kx, (N, Cin, D, H, W), jnp.float32)
    weight = jax.random.normal(kw_, (Cout, Cin, kD, kH, kW), jnp.float32) * 0.1
    bias = jax.random.normal(kb, (Cout,), jnp.float32) * 0.1
    gamma = 1.0 + 0.1 * jax.random.normal(kg, (Cout,), jnp.float32)
    beta = 0.1 * jax.random.normal(kbe, (Cout,), jnp.float32)
    running_mean = 0.1 * jax.random.normal(km, (Cout,), jnp.float32)
    running_var = 1.0 + 0.1 * jax.random.uniform(kv, (Cout,), jnp.float32)

    out = conv3d_bn_relu(x, weight, bias, gamma, beta,
                         running_mean, running_var)
    out = jax.block_until_ready(out)

    ref = _reference(x, weight, bias, gamma, beta, running_mean, running_var)
    ref = jax.block_until_ready(ref)

    np.testing.assert_allclose(np.asarray(out), np.asarray(ref),
                               rtol=1e-4, atol=1e-4)
    print("KERNEL_OK")
</pallas_src>

<mosaic_0001>
module attributes {stable_mosaic.version = 11 : i64} {
  func.func @_conv3d_bn_relu_kernel(%arg0: i32, %arg1: i32, %arg2: memref<2x8x8x128xf32, #tpu.memory_space<any>>, %arg3: memref<8x216xf32, #tpu.memory_space<vmem>>, %arg4: memref<8x1xf32, #tpu.memory_space<vmem>>, %arg5: memref<1x8x768xf32, #tpu.memory_space<vmem>>, %arg6: memref<2x8x8x128xf32, #tpu.memory_space<vmem>>, %arg7: memref<216x768xf32, #tpu.memory_space<vmem>>, %arg8: memref<2x!tpu.dma_semaphore, #tpu.memory_space<semaphore_mem>>) attributes {dimension_semantics = [#tpu.dimension_semantics<parallel>, #tpu.dimension_semantics<arbitrary>], iteration_bounds = array<i64: 2, 1>, scalar_prefetch = 0 : i64, scratch_operands = 3 : i64, tpu.core_type = #tpu.core_type<tc>, window_params = [{}, {pipeline_mode = #tpu.pipeline_mode<synchronous>, transform_indices = @transform_1, window_bounds = array<i64: 8, 216>}, {pipeline_mode = #tpu.pipeline_mode<synchronous>, transform_indices = @transform_2, window_bounds = array<i64: 8, 1>}, {transform_indices = @transform_3, window_bounds = array<i64: 1, 8, 768>}]} {
    %c2_i32 = arith.constant 2 : i32
    %c0_i32 = arith.constant 0 : i32
    %0 = arith.cmpi eq, %c2_i32, %c0_i32 : i32
    %c1_i32 = arith.constant 1 : i32
    %1 = arith.select %0, %c1_i32, %c2_i32 : i32
    %2 = arith.remsi %arg1, %1 : i32
    %c0_i32_0 = arith.constant 0 : i32
    %3 = arith.cmpi ne, %2, %c0_i32_0 : i32
    %c0_i32_1 = arith.constant 0 : i32
    %4 = arith.cmpi slt, %2, %c0_i32_1 : i32
    %c0_i32_2 = arith.constant 0 : i32
    %5 = arith.cmpi slt, %1, %c0_i32_2 : i32
    %6 = arith.xori %4, %5 : i1
    %7 = arith.andi %6, %3 : i1
    %8 = arith.addi %2, %1 : i32
    %9 = arith.select %7, %8, %2 : i32
    %c0_i32_3 = arith.constant 0 : i32
    %10 = arith.cmpi eq, %arg1, %c0_i32_3 : i32
    %11 = arith.extui %10 : i1 to i32
    %c0_i32_4 = arith.constant 0 : i32
    %12 = arith.cmpi ne, %11, %c0_i32_4 : i32
    scf.if %12 {
      %c0_i32_333 = arith.constant 0 : i32
      %c0_i32_334 = arith.constant 0 : i32
      %c0_i32_335 = arith.constant 0 : i32
      %c0_i32_336 = arith.constant 0 : i32
      %c0_i32_337 = arith.constant 0 : i32
      %413 = tpu.memref_slice %arg2[%arg0, %c0_i32_335, %c0_i32_336, %c0_i32_337] : memref<2x8x8x128xf32, #tpu.memory_space<any>> -> memref<1x8x8x128xf32, #tpu.memory_space<any>>
      %414 = tpu.memref_squeeze %413 : memref<1x8x8x128xf32, #tpu.memory_space<any>> -> memref<8x8x128xf32, #tpu.memory_space<any>>
      %c0_i32_338 = arith.constant 0 : i32
      %c0_i32_339 = arith.constant 0 : i32
      %c0_i32_340 = arith.constant 0 : i32
      %415 = tpu.memref_slice %arg6[%c0_i32_333, %c0_i32_338, %c0_i32_339, %c0_i32_340] : memref<2x8x8x128xf32, #tpu.memory_space<vmem>> -> memref<1x8x8x128xf32, #tpu.memory_space<vmem>>
      %416 = tpu.memref_squeeze %415 : memref<1x8x8x128xf32, #tpu.memory_space<vmem>> -> memref<8x8x128xf32, #tpu.memory_space<vmem>>
      %417 = tpu.memref_slice %arg8[%c0_i32_334] : memref<2x!tpu.dma_semaphore, #tpu.memory_space<semaphore_mem>> -> memref<1x!tpu.dma_semaphore, #tpu.memory_space<semaphore_mem>>
      %418 = tpu.memref_squeeze %417 : memref<1x!tpu.dma_semaphore, #tpu.memory_space<semaphore_mem>> -> memref<!tpu.dma_semaphore, #tpu.memory_space<semaphore_mem>>
      tpu.enqueue_dma source(%414 : memref<8x8x128xf32, #tpu.memory_space<any>>) target(%416 : memref<8x8x128xf32, #tpu.memory_space<vmem>>) target_semaphore(%418 : memref<!tpu.dma_semaphore, #tpu.memory_space<semaphore_mem>>)
    } else {
    }
    %c6_i32 = arith.constant 6 : i32
    %13 = arith.muli %arg1, %c6_i32 : i32
    %c0_i32_5 = arith.constant 0 : i32
    %c0_i32_6 = arith.constant 0 : i32
    %14 = tpu.memref_slice %arg2[%arg0, %13, %c0_i32_5, %c0_i32_6] : memref<2x8x8x128xf32, #tpu.memory_space<any>> -> memref<1x8x8x128xf32, #tpu.memory_space<any>>
    %15 = tpu.memref_squeeze %14 : memref<1x8x8x128xf32, #tpu.memory_space<any>> -> memref<8x8x128xf32, #tpu.memory_space<any>>
    %c0_i32_7 = arith.constant 0 : i32
    %c0_i32_8 = arith.constant 0 : i32
    %c0_i32_9 = arith.constant 0 : i32
    %16 = tpu.memref_slice %arg6[%9, %c0_i32_7, %c0_i32_8, %c0_i32_9] : memref<2x8x8x128xf32, #tpu.memory_space<vmem>> -> memref<1x8x8x128xf32, #tpu.memory_space<vmem>>
    %17 = tpu.memref_squeeze %16 : memref<1x8x8x128xf32, #tpu.memory_space<vmem>> -> memref<8x8x128xf32, #tpu.memory_space<vmem>>
    %18 = tpu.memref_slice %arg8[%9] : memref<2x!tpu.dma_semaphore, #tpu.memory_space<semaphore_mem>> -> memref<1x!tpu.dma_semaphore, #tpu.memory_space<semaphore_mem>>
    %19 = tpu.memref_squeeze %18 : memref<1x!tpu.dma_semaphore, #tpu.memory_space<semaphore_mem>> -> memref<!tpu.dma_semaphore, #tpu.memory_space<semaphore_mem>>
    tpu.wait_dma2 semaphore(%19 : memref<!tpu.dma_semaphore, #tpu.memory_space<semaphore_mem>>) src(%15 : memref<8x8x128xf32, #tpu.memory_space<any>>) dst(%17 : memref<8x8x128xf32, #tpu.memory_space<vmem>>)
    %c1_i32_10 = arith.constant 1 : i32
    %20 = arith.addi %arg1, %c1_i32_10 : i32
    %c1_i32_11 = arith.constant 1 : i32
    %21 = arith.cmpi slt, %20, %c1_i32_11 : i32
    %22 = arith.extui %21 : i1 to i32
    %c0_i32_12 = arith.constant 0 : i32
    %23 = arith.cmpi ne, %22, %c0_i32_12 : i32
    scf.if %23 {
      %c1_i32_333 = arith.constant 1 : i32
      %413 = arith.addi %arg1, %c1_i32_333 : i32
      %c1_i32_334 = arith.constant 1 : i32
      %414 = arith.subi %c1_i32_334, %9 : i32
      %c6_i32_335 = arith.constant 6 : i32
      %415 = arith.muli %413, %c6_i32_335 : i32
      %c0_i32_336 = arith.constant 0 : i32
      %c0_i32_337 = arith.constant 0 : i32
      %416 = tpu.memref_slice %arg2[%arg0, %415, %c0_i32_336, %c0_i32_337] : memref<2x8x8x128xf32, #tpu.memory_space<any>> -> memref<1x8x8x128xf32, #tpu.memory_space<any>>
      %417 = tpu.memref_squeeze %416 : memref<1x8x8x128xf32, #tpu.memory_space<any>> -> memref<8x8x128xf32, #tpu.memory_space<any>>
      %c0_i32_338 = arith.constant 0 : i32
      %c0_i32_339 = arith.constant 0 : i32
      %c0_i32_340 = arith.constant 0 : i32
      %418 = tpu.memref_slice %arg6[%414, %c0_i32_338, %c0_i32_339, %c0_i32_340] : memref<2x8x8x128xf32, #tpu.memory_space<vmem>> -> memref<1x8x8x128xf32, #tpu.memory_space<vmem>>
      %419 = tpu.memref_squeeze %418 : memref<1x8x8x128xf32, #tpu.memory_space<vmem>> -> memref<8x8x128xf32, #tpu.memory_space<vmem>>
      %420 = tpu.memref_slice %arg8[%414] : memref<2x!tpu.dma_semaphore, #tpu.memory_space<semaphore_mem>> -> memref<1x!tpu.dma_semaphore, #tpu.memory_space<semaphore_mem>>
      %421 = tpu.memref_squeeze %420 : memref<1x!tpu.dma_semaphore, #tpu.memory_space<semaphore_mem>> -> memref<!tpu.dma_semaphore, #tpu.memory_space<semaphore_mem>>
      tpu.enqueue_dma source(%417 : memref<8x8x128xf32, #tpu.memory_space<any>>) target(%419 : memref<8x8x128xf32, #tpu.memory_space<vmem>>) target_semaphore(%421 : memref<!tpu.dma_semaphore, #tpu.memory_space<semaphore_mem>>)
    } else {
    }
    %24 = arith.index_cast %9 : i32 to index
    %c0 = arith.constant 0 : index
    %c0_13 = arith.constant 0 : index
    %c0_14 = arith.constant 0 : index
    %25 = vector.load %arg6[%24, %c0, %c0_13, %c0_14] : memref<2x8x8x128xf32, #tpu.memory_space<vmem>>, vector<1x1x8x128xf32>
    %26 = vector.shape_cast %25 : vector<1x1x8x128xf32> to vector<8x128xf32>
    %c0_15 = arith.constant 0 : index
    %c0_16 = arith.constant 0 : index
    %27 = vector.load %arg7[%c0_15, %c0_16] : memref<216x768xf32, #tpu.memory_space<vmem>>, vector<8x128xf32>
    tpu.vector_store %arg7[%c0_15, %c0_16], %26 {strides = array<i32>} : memref<216x768xf32, #tpu.memory_space<vmem>>, vector<8x128xf32>,
    %28 = vector.extract_strided_slice %26 {offsets = [0, 1], sizes = [8, 127], strides = [1, 1]} : vector<8x128xf32> to vector<8x127xf32>
    %29 = vector.extract_strided_slice %26 {offsets = [0, 0], sizes = [8, 1], strides = [1, 1]} : vector<8x128xf32> to vector<8x1xf32>
    %30 = tpu.concatenate %28, %29 in 1 : vector<8x127xf32>, vector<8x1xf32> -> vector<8x128xf32>
    %c8 = arith.constant 8 : index
    %c0_17 = arith.constant 0 : index
    %31 = vector.load %arg7[%c8, %c0_17] : memref<216x768xf32, #tpu.memory_space<vmem>>, vector<8x128xf32>
    tpu.vector_store %arg7[%c8, %c0_17], %30 {strides = array<i32>} : memref<216x768xf32, #tpu.memory_space<vmem>>, vector<8x128xf32>,
    %32 = vector.extract_strided_slice %26 {offsets = [0, 2], sizes = [8, 126], strides = [1, 1]} : vector<8x128xf32> to vector<8x126xf32>
    %33 = vector.extract_strided_slice %26 {offsets = [0, 0], sizes = [8, 2], strides = [1, 1]} : vector<8x128xf32> to vector<8x2xf32>
    %34 = tpu.concatenate %32, %33 in 1 : vector<8x126xf32>, vector<8x2xf32> -> vector<8x128xf32>
    %c16 = arith.constant 16 : index
    %c0_18 = arith.constant 0 : index
    %35 = vector.load %arg7[%c16, %c0_18] : memref<216x768xf32, #tpu.memory_space<vmem>>, vector<8x128xf32>
    tpu.vector_store %arg7[%c16, %c0_18], %34 {strides = array<i32>} : memref<216x768xf32, #tpu.memory_space<vmem>>, vector<8x128xf32>,
    %36 = vector.extract_strided_slice %26 {offsets = [0, 8], sizes = [8, 120], strides = [1, 1]} : vector<8x128xf32> to vector<8x120xf32>
    %37 = vector.extract_strided_slice %26 {offsets = [0, 0], sizes = [8, 8], strides = [1, 1]} : vector<8x128xf32> to vector<8x8xf32>
    %38 = tpu.concatenate %36, %37 in 1 : vector<8x120xf32>, vector<8x8xf32> -> vector<8x128xf32>
    %c24 = arith.constant 24 : index
    %c0_19 = arith.constant 0 : index
    %39 = vector.load %arg7[%c24, %c0_19] : memref<216x768xf32, #tpu.memory_space<vmem>>, vector<8x128xf32>
    tpu.vector_store %arg7[%c24, %c0_19], %38 {strides = array<i32>} : memref<216x768xf32, #tpu.memory_space<vmem>>, vector<8x128xf32>,
    %40 = vector.extract_strided_slice %26 {offsets = [0, 9], sizes = [8, 119], strides = [1, 1]} : vector<8x128xf32> to vector<8x119xf32>
    %41 = vector.extract_strided_slice %26 {offsets = [0, 0], sizes = [8, 9], strides = [1, 1]} : vector<8x128xf32> to vector<8x9xf32>
    %42 = tpu.concatenate %40, %41 in 1 : vector<8x119xf32>, vector<8x9xf32> -> vector<8x128xf32>
    %c32 = arith.constant 32 : index
    %c0_20 = arith.constant 0 : index
    %43 = vector.load %arg7[%c32, %c0_20] : memref<216x768xf32, #tpu.memory_space<vmem>>, vector<8x128xf32>
    tpu.vector_store %arg7[%c32, %c0_20], %42 {strides = array<i32>} : memref<216x768xf32, #tpu.memory_space<vmem>>, vector<8x128xf32>,
    %44 = vector.extract_strided_slice %26 {offsets = [0, 10], sizes = [8, 118], strides = [1, 1]} : vector<8x128xf32> to vector<8x118xf32>
    %45 = vector.extract_strided_slice %26 {offsets = [0, 0], sizes = [8, 10], strides = [1, 1]} : vector<8x128xf32> to vector<8x10xf32>
    %46 = tpu.concatenate %44, %45 in 1 : vector<8x118xf32>, vector<8x10xf32> -> vector<8x128xf32>
    %c40 = arith.constant 40 : index
    %c0_21 = arith.constant 0 : index
    %47 = vector.load %arg7[%c40, %c0_21] : memref<216x768xf32, #tpu.memory_space<vmem>>, vector<8x128xf32>
    tpu.vector_store %arg7[%c40, %c0_21], %46 {strides = array<i32>} : memref<216x768xf32, #tpu.memory_space<vmem>>, vector<8x128xf32>,
    %48 = vector.extract_strided_slice %26 {offsets = [0, 16], sizes = [8, 112], strides = [1, 1]} : vector<8x128xf32> to vector<8x112xf32>
    %49 = vector.extract_strided_slice %26 {offsets = [0, 0], sizes = [8, 16], strides = [1, 1]} : vector<8x128xf32> to vector<8x16xf32>
    %50 = tpu.concatenate %48, %49 in 1 : vector<8x112xf32>, vector<8x16xf32> -> vector<8x128xf32>
    %c48 = arith.constant 48 : index
    %c0_22 = arith.constant 0 : index
    %51 = vector.load %arg7[%c48, %c0_22] : memref<216x768xf32, #tpu.memory_space<vmem>>, vector<8x128xf32>
    tpu.vector_store %arg7[%c48, %c0_22], %50 {strides = array<i32>} : memref<216x768xf32, #tpu.memory_space<vmem>>, vector<8x128xf32>,
    %52 = vector.extract_strided_slice %26 {offsets = [0, 17], sizes = [8, 111], strides = [1, 1]} : vector<8x128xf32> to vector<8x111xf32>
    %53 = vector.extract_strided_slice %26 {offsets = [0, 0], sizes = [8, 17], strides = [1, 1]} : vector<8x128xf32> to vector<8x17xf32>
    %54 = tpu.concatenate %52, %53 in 1 : vector<8x111xf32>, vector<8x17xf32> -> vector<8x128xf32>
    %c56 = arith.constant 56 : index
    %c0_23 = arith.constant 0 : index
    %55 = vector.load %arg7[%c56, %c0_23] : memref<216x768xf32, #tpu.memory_space<vmem>>, vector<8x128xf32>
    tpu.vector_store %arg7[%c56, %c0_23], %54 {strides = array<i32>} : memref<216x768xf32, #tpu.memory_space<vmem>>, vector<8x128xf32>,
    %56 = vector.extract_strided_slice %26 {offsets = [0, 18], sizes = [8, 110], strides = [1, 1]} : vector<8x128xf32> to vector<8x110xf32>
    %57 = vector.extract_strided_slice %26 {offsets = [0, 0], sizes = [8, 18], strides = [1, 1]} : vector<8x128xf32> to vector<8x18xf32>
    %58 = tpu.concatenate %56, %57 in 1 : vector<8x110xf32>, vector<8x18xf32> -> vector<8x128xf32>
    %c64 = arith.constant 64 : index
    %c0_24 = arith.constant 0 : index
    %59 = vector.load %arg7[%c64, %c0_24] : memref<216x768xf32, #tpu.memory_space<vmem>>, vector<8x128xf32>
    tpu.vector_store %arg7[%c64, %c0_24], %58 {strides = array<i32>} : memref<216x768xf32, #tpu.memory_space<vmem>>, vector<8x128xf32>,
    %60 = arith.index_cast %9 : i32 to index
    %c1 = arith.constant 1 : index
    %c0_25 = arith.constant 0 : index
    %c0_26 = arith.constant 0 : index
    %61 = vector.load %arg6[%60, %c1, %c0_25, %c0_26] : memref<2x8x8x128xf32, #tpu.memory_space<vmem>>, vector<1x1x8x128xf32>
    %62 = vector.shape_cast %61 : vector<1x1x8x128xf32> to vector<8x128xf32>
    %c0_27 = arith.constant 0 : index
    %c128 = arith.constant 128 : index
    %63 = vector.load %arg7[%c0_27, %c128] : memref<216x768xf32, #tpu.memory_space<vmem>>, vector<8x128xf32>
    tpu.vector_store %arg7[%c0_27, %c128], %62 {strides = array<i32>} : memref<216x768xf32, #tpu.memory_space<vmem>>, vector<8x128xf32>,
    %c72 = arith.constant 72 : index
    %c0_28 = arith.constant 0 : index
    %64 = vector.load %arg7[%c72, %c0_28] : memref<216x768xf32, #tpu.memory_space<vmem>>, vector<8x128xf32>
    tpu.vector_store %arg7[%c72, %c0_28], %62 {strides = array<i32>} : memref<216x768xf32, #tpu.memory_space<vmem>>, vector<8x128xf32>,
    %65 = vector.extract_strided_slice %62 {offsets = [0, 1], sizes = [8, 127], strides = [1, 1]} : vector<8x128xf32> to vector<8x127xf32>
    %66 = vector.extract_strided_slice %62 {offsets = [0, 0], sizes = [8, 1], strides = [1, 1]} : vector<8x128xf32> to vector<8x1xf32>
    %67 = tpu.concatenate %65, %66 in 1 : vector<8x127xf32>, vector<8x1xf32> -> vector<8x128xf32>
    %c8_29 = arith.constant 8 : index
    %c128_30 = arith.constant 128 : index
    %68 = vector.load %arg7[%c8_29, %c128_30] : memref<216x768xf32, #tpu.memory_space<vmem>>, vector<8x128xf32>
    tpu.vector_store %arg7[%c8_29, %c128_30], %67 {strides = array<i32>} : memref<216x768xf32, #tpu.memory_space<vmem>>, vector<8x128xf32>,
    %c80 = arith.constant 80 : index
    %c0_31 = arith.constant 0 : index
    %69 = vector.load %arg7[%c80, %c0_31] : memref<216x768xf32, #tpu.memory_space<vmem>>, vector<8x128xf32>
    tpu.vector_store %arg7[%c80, %c0_31], %67 {strides = array<i32>} : memref<216x768xf32, #tpu.memory_space<vmem>>, vector<8x128xf32>,
    %70 = vector.extract_strided_slice %62 {offsets = [0, 2], sizes = [8, 126], strides = [1, 1]} : vector<8x128xf32> to vector<8x126xf32>
    %71 = vector.extract_strided_slice %62 {offsets = [0, 0], sizes = [8, 2], strides = [1, 1]} : vector<8x128xf32> to vector<8x2xf32>
    %72 = tpu.concatenate %70, %71 in 1 : vector<8x126xf32>, vector<8x2xf32> -> vector<8x128xf32>
    %c16_32 = arith.constant 16 : index
    %c128_33 = arith.constant 128 : index
    %73 = vector.load %arg7[%c16_32, %c128_33] : memref<216x768xf32, #tpu.memory_space<vmem>>, vector<8x128xf32>
    tpu.vector_store %arg7[%c16_32, %c128_33], %72 {strides = array<i32>} : memref<216x768xf32, #tpu.memory_space<vmem>>, vector<8x128xf32>,
    %c88 = arith.constant 88 : index
    %c0_34 = arith.constant 0 : index
    %74 = vector.load %arg7[%c88, %c0_34] : memref<216x768xf32, #tpu.memory_space<vmem>>, vector<8x128xf32>
    tpu.vector_store %arg7[%c88, %c0_34], %72 {strides = array<i32>} : memref<216x768xf32, #tpu.memory_space<vmem>>, vector<8x128xf32>,
    %75 = vector.extract_strided_slice %62 {offsets = [0, 8], sizes = [8, 120], strides = [1, 1]} : vector<8x128xf32> to vector<8x120xf32>
    %76 = vector.extract_strided_slice %62 {offsets = [0, 0], sizes = [8, 8], strides = [1, 1]} : vector<8x128xf32> to vector<8x8xf32>
    %77 = tpu.concatenate %75, %76 in 1 : vector<8x120xf32>, vector<8x8xf32> -> vector<8x128xf32>
    %c24_35 = arith.constant 24 : index
    %c128_36 = arith.constant 128 : index
    %78 = vector.load %arg7[%c24_35, %c128_36] : memref<216x768xf32, #tpu.memory_space<vmem>>, vector<8x128xf32>
    tpu.vector_store %arg7[%c24_35, %c128_36], %77 {strides = array<i32>} : memref<216x768xf32, #tpu.memory_space<vmem>>, vector<8x128xf32>,
    %c96 = arith.constant 96 : index
    %c0_37 = arith.constant 0 : index
    %79 = vector.load %arg7[%c96, %c0_37] : memref<216x768xf32, #tpu.memory_space<vmem>>, vector<8x128xf32>
    tpu.vector_store %arg7[%c96, %c0_37], %77 {strides = array<i32>} : memref<216x768xf32, #tpu.memory_space<vmem>>, vector<8x128xf32>,
    %80 = vector.extract_strided_slice %62 {offsets = [0, 9], sizes = [8, 119], strides = [1, 1]} : vector<8x128xf32> to vector<8x119xf32>
    %81 = vector.extract_strided_slice %62 {offsets = [0, 0], sizes = [8, 9], strides = [1, 1]} : vector<8x128xf32> to vector<8x9xf32>
    %82 = tpu.concatenate %80, %81 in 1 : vector<8x119xf32>, vector<8x9xf32> -> vector<8x128xf32>
    %c32_38 = arith.constant 32 : index
    %c128_39 = arith.constant 128 : index
    %83 = vector.load %arg7[%c32_38, %c128_39] : memref<216x768xf32, #tpu.memory_space<vmem>>, vector<8x128xf32>
    tpu.vector_store %arg7[%c32_38, %c128_39], %82 {strides = array<i32>} : memref<216x768xf32, #tpu.memory_space<vmem>>, vector<8x128xf32>,
    %c104 = arith.constant 104 : index
    %c0_40 = arith.constant 0 : index
    %84 = vector.load %arg7[%c104, %c0_40] : memref<216x768xf32, #tpu.memory_space<vmem>>, vector<8x128xf32>
    tpu.vector_store %arg7[%c104, %c0_40], %82 {strides = array<i32>} : memref<216x768xf32, #tpu.memory_space<vmem>>, vector<8x128xf32>,
    %85 = vector.extract_strided_slice %62 {offsets = [0, 10], sizes = [8, 118], strides = [1, 1]} : vector<8x128xf32> to vector<8x118xf32>
    %86 = vector.extract_strided_slice %62 {offsets = [0, 0], sizes = [8, 10], strides = [1, 1]} : vector<8x128xf32> to vector<8x10xf32>
    %87 = tpu.concatenate %85, %86 in 1 : vector<8x118xf32>, vector<8x10xf32> -> vector<8x128xf32>
    %c40_41 = arith.constant 40 : index
    %c128_42 = arith.constant 128 : index
    %88 = vector.load %arg7[%c40_41, %c128_42] : memref<216x768xf32, #tpu.memory_space<vmem>>, vector<8x128xf32>
    tpu.vector_store %arg7[%c40_41, %c128_42], %87 {strides = array<i32>} : memref<216x768xf32, #tpu.memory_space<vmem>>, vector<8x128xf32>,
    %c112 = arith.constant 112 : index
    %c0_43 = arith.constant 0 : index
    %89 = vector.load %arg7[%c112, %c0_43] : memref<216x768xf32, #tpu.memory_space<vmem>>, vector<8x128xf32>
    tpu.vector_store %arg7[%c112, %c0_43], %87 {strides = array<i32>} : memref<216x768xf32, #tpu.memory_space<vmem>>, vector<8x128xf32>,
    %90 = vector.extract_strided_slice %62 {offsets = [0, 16], sizes = [8, 112], strides = [1, 1]} : vector<8x128xf32> to vector<8x112xf32>
    %91 = vector.extract_strided_slice %62 {offsets = [0, 0], sizes = [8, 16], strides = [1, 1]} : vector<8x128xf32> to vector<8x16xf32>
    %92 = tpu.concatenate %90, %91 in 1 : vector<8x112xf32>, vector<8x16xf32> -> vector<8x128xf32>
    %c48_44 = arith.constant 48 : index
    %c128_45 = arith.constant 128 : index
    %93 = vector.load %arg7[%c48_44, %c128_45] : memref<216x768xf32, #tpu.memory_space<vmem>>, vector<8x128xf32>
    tpu.vector_store %arg7[%c48_44, %c128_45], %92 {strides = array<i32>} : memref<216x768xf32, #tpu.memory_space<vmem>>, vector<8x128xf32>,
    %c120 = arith.constant 120 : index
    %c0_46 = arith.constant 0 : index
    %94 = vector.load %arg7[%c120, %c0_46] : memref<216x768xf32, #tpu.memory_space<vmem>>, vector<8x128xf32>
    tpu.vector_store %arg7[%c120, %c0_46], %92 {strides = array<i32>} : memref<216x768xf32, #tpu.memory_space<vmem>>, vector<8x128xf32>,
    %95 = vector.extract_strided_slice %62 {offsets = [0, 17], sizes = [8, 111], strides = [1, 1]} : vector<8x128xf32> to vector<8x111xf32>
    %96 = vector.extract_strided_slice %62 {offsets = [0, 0], sizes = [8, 17], strides = [1, 1]} : vector<8x128xf32> to vector<8x17xf32>
    %97 = tpu.concatenate %95, %96 in 1 : vector<8x111xf32>, vector<8x17xf32> -> vector<8x128xf32>
    %c56_47 = arith.constant 56 : index
    %c128_48 = arith.constant 128 : index
    %98 = vector.load %arg7[%c56_47, %c128_48] : memref<216x768xf32, #tpu.memory_space<vmem>>, vector<8x128xf32>
    tpu.vector_store %arg7[%c56_47, %c128_48], %97 {strides = array<i32>} : memref<216x768xf32, #tpu.memory_space<vmem>>, vector<8x128xf32>,
    %c128_49 = arith.constant 128 : index
    %c0_50 = arith.constant 0 : index
    %99 = vector.load %arg7[%c128_49, %c0_50] : memref<216x768xf32, #tpu.memory_space<vmem>>, vector<8x128xf32>
    tpu.vector_store %arg7[%c128_49, %c0_50], %97 {strides = array<i32>} : memref<216x768xf32, #tpu.memory_space<vmem>>, vector<8x128xf32>,
    %100 = vector.extract_strided_slice %62 {offsets = [0, 18], sizes = [8, 110], strides = [1, 1]} : vector<8x128xf32> to vector<8x110xf32>
    %101 = vector.extract_strided_slice %62 {offsets = [0, 0], sizes = [8, 18], strides = [1, 1]} : vector<8x128xf32> to vector<8x18xf32>
    %102 = tpu.concatenate %100, %101 in 1 : vector<8x110xf32>, vector<8x18xf32> -> vector<8x128xf32>
    %c64_51 = arith.constant 64 : index
    %c128_52 = arith.constant 128 : index
    %103 = vector.load %arg7[%c64_51, %c128_52] : memref<216x768xf32, #tpu.memory_space<vmem>>, vector<8x128xf32>
    tpu.vector_store %arg7[%c64_51, %c128_52], %102 {strides = array<i32>} : memref<216x768xf32, #tpu.memory_space<vmem>>, vector<8x128xf32>,
    %c136 = arith.constant 136 : index
    %c0_53 = arith.constant 0 : index
    %104 = vector.load %arg7[%c136, %c0_53] : memref<216x768xf32, #tpu.memory_space<vmem>>, vector<8x128xf32>
    tpu.vector_store %arg7[%c136, %c0_53], %102 {strides = array<i32>} : memref<216x768xf32, #tpu.memory_space<vmem>>, vector<8x128xf32>,
    %105 = arith.index_cast %9 : i32 to index
    %c2 = arith.constant 2 : index
    %c0_54 = arith.constant 0 : index
    %c0_55 = arith.constant 0 : index
    %106 = vector.load %arg6[%105, %c2, %c0_54, %c0_55] : memref<2x8x8x128xf32, #tpu.memory_space<vmem>>, vector<1x1x8x128xf32>
    %107 = vector.shape_cast %106 : vector<1x1x8x128xf32> to vector<8x128xf32>
    %c0_56 = arith.constant 0 : index
    %c256 = arith.constant 256 : index
    %108 = vector.load %arg7[%c0_56, %c256] : memref<216x768xf32, #tpu.memory_space<vmem>>, vector<8x128xf32>
    tpu.vector_store %arg7[%c0_56, %c256], %107 {strides = array<i32>} : memref<216x768xf32, #tpu.memory_space<vmem>>, vector<8x128xf32>,
    %c72_57 = arith.constant 72 : index
    %c128_58 = arith.constant 128 : index
    %109 = vector.load %arg7[%c72_57, %c128_58] : memref<216x768xf32, #tpu.memory_space<vmem>>, vector<8x128xf32>
    tpu.vector_store %arg7[%c72_57, %c128_58], %107 {strides = array<i32>} : memref<216x768xf32, #tpu.memory_space<vmem>>, vector<8x128xf32>,
    %c144 = arith.constant 144 : index
    %c0_59 = arith.constant 0 : index
    %110 = vector.load %arg7[%c144, %c0_59] : memref<216x768xf32, #tpu.memory_space<vmem>>, vector<8x128xf32>
    tpu.vector_store %arg7[%c144, %c0_59], %107 {strides = array<i32>} : memref<216x768xf32, #tpu.memory_space<vmem>>, vector<8x128xf32>,
    %111 = vector.extract_strided_slice %107 {offsets = [0, 1], sizes = [8, 127], strides = [1, 1]} : vector<8x128xf32> to vector<8x127xf32>
    %112 = vector.extract_strided_slice %107 {offsets = [0, 0], sizes = [8, 1], strides = [1, 1]} : vector<8x128xf32> to vector<8x1xf32>
    %113 = tpu.concatenate %111, %112 in 1 : vector<8x127xf32>, vector<8x1xf32> -> vector<8x128xf32>
    %c8_60 = arith.constant 8 : index
    %c256_61 = arith.constant 256 : index
    %114 = vector.load %arg7[%c8_60, %c256_61] : memref<216x768xf32, #tpu.memory_space<vmem>>, vector<8x128xf32>
    tpu.vector_store %arg7[%c8_60, %c256_61], %113 {strides = array<i32>} : memref<216x768xf32, #tpu.memory_space<vmem>>, vector<8x128xf32>,
    %c80_62 = arith.constant 80 : index
    %c128_63 = arith.constant 128 : index
    %115 = vector.load %arg7[%c80_62, %c128_63] : memref<216x768xf32, #tpu.memory_space<vmem>>, vector<8x128xf32>
    tpu.vector_store %arg7[%c80_62, %c128_63], %113 {strides = array<i32>} : memref<216x768xf32, #tpu.memory_space<vmem>>, vector<8x128xf32>,
    %c152 = arith.constant 152 : index
    %c0_64 = arith.constant 0 : index
    %116 = vector.load %arg7[%c152, %c0_64] : memref<216x768xf32, #tpu.memory_space<vmem>>, vector<8x128xf32>
    tpu.vector_store %arg7[%c152, %c0_64], %113 {strides = array<i32>} : memref<216x768xf32, #tpu.memory_space<vmem>>, vector<8x128xf32>,
    %117 = vector.extract_strided_slice %107 {offsets = [0, 2], sizes = [8, 126], strides = [1, 1]} : vector<8x128xf32> to vector<8x126xf32>
    %118 = vector.extract_strided_slice %107 {offsets = [0, 0], sizes = [8, 2], strides = [1, 1]} : vector<8x128xf32> to vector<8x2xf32>
    %119 = tpu.concatenate %117, %118 in 1 : vector<8x126xf32>, vector<8x2xf32> -> vector<8x128xf32>
    %c16_65 = arith.constant 16 : index
    %c256_66 = arith.constant 256 : index
    %120 = vector.load %arg7[%c16_65, %c256_66] : memref<216x768xf32, #tpu.memory_space<vmem>>, vector<8x128xf32>
    tpu.vector_store %arg7[%c16_65, %c256_66], %119 {strides = array<i32>} : memref<216x768xf32, #tpu.memory_space<vmem>>, vector<8x128xf32>,
    %c88_67 = arith.constant 88 : index
    %c128_68 = arith.constant 128 : index
    %121 = vector.load %arg7[%c88_67, %c128_68] : memref<216x768xf32, #tpu.memory_space<vmem>>, vector<8x128xf32>
    tpu.vector_store %arg7[%c88_67, %c128_68], %119 {strides = array<i32>} : memref<216x768xf32, #tpu.memory_space<vmem>>, vector<8x128xf32>,
    %c160 = arith.constant 160 : index
    %c0_69 = arith.constant 0 : index
    %122 = vector.load %arg7[%c160, %c0_69] : memref<216x768xf32, #tpu.memory_space<vmem>>, vector<8x128xf32>
    tpu.vector_store %arg7[%c160, %c0_69], %119 {strides = array<i32>} : memref<216x768xf32, #tpu.memory_space<vmem>>, vector<8x128xf32>,
    %123 = vector.extract_strided_slice %107 {offsets = [0, 8], sizes = [8, 120], strides = [1, 1]} : vector<8x128xf32> to vector<8x120xf32>
    %124 = vector.extract_strided_slice %107 {offsets = [0, 0], sizes = [8, 8], strides = [1, 1]} : vector<8x128xf32> to vector<8x8xf32>
    %125 = tpu.concatenate %123, %124 in 1 : vector<8x120xf32>, vector<8x8xf32> -> vector<8x128xf32>
    %c24_70 = arith.constant 24 : index
    %c256_71 = arith.constant 256 : index
    %126 = vector.load %arg7[%c24_70, %c256_71] : memref<216x768xf32, #tpu.memory_space<vmem>>, vector<8x128xf32>
    tpu.vector_store %arg7[%c24_70, %c256_71], %125 {strides = array<i32>} : memref<216x768xf32, #tpu.memory_space<vmem>>, vector<8x128xf32>,
    %c96_72 = arith.constant 96 : index
    %c128_73 = arith.constant 128 : index
    %127 = vector.load %arg7[%c96_72, %c128_73] : memref<216x768xf32, #tpu.memory_space<vmem>>, vector<8x128xf32>
    tpu.vector_store %arg7[%c96_72, %c128_73], %125 {strides = array<i32>} : memref<216x768xf32, #tpu.memory_space<vmem>>, vector<8x128xf32>,
    %c168 = arith.constant 168 : index
    %c0_74 = arith.constant 0 : index
    %128 = vector.load %arg7[%c168, %c0_74] : memref<216x768xf32, #tpu.memory_space<vmem>>, vector<8x128xf32>
    tpu.vector_store %arg7[%c168, %c0_74], %125 {strides = array<i32>} : memref<216x768xf32, #tpu.memory_space<vmem>>, vector<8x128xf32>,
    %129 = vector.extract_strided_slice %107 {offsets = [0, 9], sizes = [8, 119], strides = [1, 1]} : vector<8x128xf32> to vector<8x119xf32>
    %130 = vector.extract_strided_slice %107 {offsets = [0, 0], sizes = [8, 9], strides = [1, 1]} : vector<8x128xf32> to vector<8x9xf32>
    %131 = tpu.concatenate %129, %130 in 1 : vector<8x119xf32>, vector<8x9xf32> -> vector<8x128xf32>
    %c32_75 = arith.constant 32 : index
    %c256_76 = arith.constant 256 : index
    %132 = vector.load %arg7[%c32_75, %c256_76] : memref<216x768xf32, #tpu.memory_space<vmem>>, vector<8x128xf32>
    tpu.vector_store %arg7[%c32_75, %c256_76], %131 {strides = array<i32>} : memref<216x768xf32, #tpu.memory_space<vmem>>, vector<8x128xf32>,
    %c104_77 = arith.constant 104 : index
    %c128_78 = arith.constant 128 : index
    %133 = vector.load %arg7[%c104_77, %c128_78] : memref<216x768xf32, #tpu.memory_space<vmem>>, vector<8x128xf32>
    tpu.vector_store %arg7[%c104_77, %c128_78], %131 {strides = array<i32>} : memref<216x768xf32, #tpu.memory_space<vmem>>, vector<8x128xf32>,
    %c176 = arith.constant 176 : index
    %c0_79 = arith.constant 0 : index
    %134 = vector.load %arg7[%c176, %c0_79] : memref<216x768xf32, #tpu.memory_space<vmem>>, vector<8x128xf32>
    tpu.vector_store %arg7[%c176, %c0_79], %131 {strides = array<i32>} : memref<216x768xf32, #tpu.memory_space<vmem>>, vector<8x128xf32>,
    %135 = vector.extract_strided_slice %107 {offsets = [0, 10], sizes = [8, 118], strides = [1, 1]} : vector<8x128xf32> to vector<8x118xf32>
    %136 = vector.extract_strided_slice %107 {offsets = [0, 0], sizes = [8, 10], strides = [1, 1]} : vector<8x128xf32> to vector<8x10xf32>
    %137 = tpu.concatenate %135, %136 in 1 : vector<8x118xf32>, vector<8x10xf32> -> vector<8x128xf32>
    %c40_80 = arith.constant 40 : index
    %c256_81 = arith.constant 256 : index
    %138 = vector.load %arg7[%c40_80, %c256_81] : memref<216x768xf32, #tpu.memory_space<vmem>>, vector<8x128xf32>
    tpu.vector_store %arg7[%c40_80, %c256_81], %137 {strides = array<i32>} : memref<216x768xf32, #tpu.memory_space<vmem>>, vector<8x128xf32>,
    %c112_82 = arith.constant 112 : index
    %c128_83 = arith.constant 128 : index
    %139 = vector.load %arg7[%c112_82, %c128_83] : memref<216x768xf32, #tpu.memory_space<vmem>>, vector<8x128xf32>
    tpu.vector_store %arg7[%c112_82, %c128_83], %137 {strides = array<i32>} : memref<216x768xf32, #tpu.memory_space<vmem>>, vector<8x128xf32>,
    %c184 = arith.constant 184 : index
    %c0_84 = arith.constant 0 : index
    %140 = vector.load %arg7[%c184, %c0_84] : memref<216x768xf32, #tpu.memory_space<vmem>>, vector<8x128xf32>
    tpu.vector_store %arg7[%c184, %c0_84], %137 {strides = array<i32>} : memref<216x768xf32, #tpu.memory_space<vmem>>, vector<8x128xf32>,
    %141 = vector.extract_strided_slice %107 {offsets = [0, 16], sizes = [8, 112], strides = [1, 1]} : vector<8x128xf32> to vector<8x112xf32>
    %142 = vector.extract_strided_slice %107 {offsets = [0, 0], sizes = [8, 16], strides = [1, 1]} : vector<8x128xf32> to vector<8x16xf32>
    %143 = tpu.concatenate %141, %142 in 1 : vector<8x112xf32>, vector<8x16xf32> -> vector<8x128xf32>
    %c48_85 = arith.constant 48 : index
    %c256_86 = arith.constant 256 : index
    %144 = vector.load %arg7[%c48_85, %c256_86] : memref<216x768xf32, #tpu.memory_space<vmem>>, vector<8x128xf32>
    tpu.vector_store %arg7[%c48_85, %c256_86], %143 {strides = array<i32>} : memref<216x768xf32, #tpu.memory_space<vmem>>, vector<8x128xf32>,
    %c120_87 = arith.constant 120 : index
    %c128_88 = arith.constant 128 : index
    %145 = vector.load %arg7[%c120_87, %c128_88] : memref<216x768xf32, #tpu.memory_space<vmem>>, vector<8x128xf32>
    tpu.vector_store %arg7[%c120_87, %c128_88], %143 {strides = array<i32>} : memref<216x768xf32, #tpu.memory_space<vmem>>, vector<8x128xf32>,
    %c192 = arith.constant 192 : index
    %c0_89 = arith.constant 0 : index
    %146 = vector.load %arg7[%c192, %c0_89] : memref<216x768xf32, #tpu.memory_space<vmem>>, vector<8x128xf32>
    tpu.vector_store %arg7[%c192, %c0_89], %143 {strides = array<i32>} : memref<216x768xf32, #tpu.memory_space<vmem>>, vector<8x128xf32>,
    %147 = vector.extract_strided_slice %107 {offsets = [0, 17], sizes = [8, 111], strides = [1, 1]} : vector<8x128xf32> to vector<8x111xf32>
    %148 = vector.extract_strided_slice %107 {offsets = [0, 0], sizes = [8, 17], strides = [1, 1]} : vector<8x128xf32> to vector<8x17xf32>
    %149 = tpu.concatenate %147, %148 in 1 : vector<8x111xf32>, vector<8x17xf32> -> vector<8x128xf32>
    %c56_90 = arith.constant 56 : index
    %c256_91 = arith.constant 256 : index
    %150 = vector.load %arg7[%c56_90, %c256_91] : memref<216x768xf32, #tpu.memory_space<vmem>>, vector<8x128xf32>
    tpu.vector_store %arg7[%c56_90, %c256_91], %149 {strides = array<i32>} : memref<216x768xf32, #tpu.memory_space<vmem>>, vector<8x128xf32>,
    %c128_92 = arith.constant 128 : index
    %c128_93 = arith.constant 128 : index
    %151 = vector.load %arg7[%c128_92, %c128_93] : memref<216x768xf32, #tpu.memory_space<vmem>>, vector<8x128xf32>
    tpu.vector_store %arg7[%c128_92, %c128_93], %149 {strides = array<i32>} : memref<216x768xf32, #tpu.memory_space<vmem>>, vector<8x128xf32>,
    %c200 = arith.constant 200 : index
    %c0_94 = arith.constant 0 : index
    %152 = vector.load %arg7[%c200, %c0_94] : memref<216x768xf32, #tpu.memory_space<vmem>>, vector<8x128xf32>
    tpu.vector_store %arg7[%c200, %c0_94], %149 {strides = array<i32>} : memref<216x768xf32, #tpu.memory_space<vmem>>, vector<8x128xf32>,
    %153 = vector.extract_strided_slice %107 {offsets = [0, 18], sizes = [8, 110], strides = [1, 1]} : vector<8x128xf32> to vector<8x110xf32>
    %154 = vector.extract_strided_slice %107 {offsets = [0, 0], sizes = [8, 18], strides = [1, 1]} : vector<8x128xf32> to vector<8x18xf32>
    %155 = tpu.concatenate %153, %154 in 1 : vector<8x110xf32>, vector<8x18xf32> -> vector<8x128xf32>
    %c64_95 = arith.constant 64 : index
    %c256_96 = arith.constant 256 : index
    %156 = vector.load %arg7[%c64_95, %c256_96] : memref<216x768xf32, #tpu.memory_space<vmem>>, vector<8x128xf32>
    tpu.vector_store %arg7[%c64_95, %c256_96], %155 {strides = array<i32>} : memref<216x768xf32, #tpu.memory_space<vmem>>, vector<8x128xf32>,
    %c136_97 = arith.constant 136 : index
    %c128_98 = arith.constant 128 : index
    %157 = vector.load %arg7[%c136_97, %c128_98] : memref<216x768xf32, #tpu.memory_space<vmem>>, vector<8x128xf32>
    tpu.vector_store %arg7[%c136_97, %c128_98], %155 {strides = array<i32>} : memref<216x768xf32, #tpu.memory_space<vmem>>, vector<8x128xf32>,
    %c208 = arith.constant 208 : index
    %c0_99 = arith.constant 0 : index
    %158 = vector.load %arg7[%c208, %c0_99] : memref<216x768xf32, #tpu.memory_space<vmem>>, vector<8x128xf32>
    tpu.vector_store %arg7[%c208, %c0_99], %155 {strides = array<i32>} : memref<216x768xf32, #tpu.memory_space<vmem>>, vector<8x128xf32>,
    %159 = arith.index_cast %9 : i32 to index
    %c3 = arith.constant 3 : index
    %c0_100 = arith.constant 0 : index
    %c0_101 = arith.constant 0 : index
    %160 = vector.load %arg6[%159, %c3, %c0_100, %c0_101] : memref<2x8x8x128xf32, #tpu.memory_space<vmem>>, vector<1x1x8x128xf32>
    %161 = vector.shape_cast %160 : vector<1x1x8x128xf32> to vector<8x128xf32>
    %c0_102 = arith.constant 0 : index
    %c384 = arith.constant 384 : index
    %162 = vector.load %arg7[%c0_102, %c384] : memref<216x768xf32, #tpu.memory_space<vmem>>, vector<8x128xf32>
    tpu.vector_store %arg7[%c0_102, %c384], %161 {strides = array<i32>} : memref<216x768xf32, #tpu.memory_space<vmem>>, vector<8x128xf32>,
    %c72_103 = arith.constant 72 : index
    %c256_104 = arith.constant 256 : index
    %163 = vector.load %arg7[%c72_103, %c256_104] : memref<216x768xf32, #tpu.memory_space<vmem>>, vector<8x128xf32>
    tpu.vector_store %arg7[%c72_103, %c256_104], %161 {strides = array<i32>} : memref<216x768xf32, #tpu.memory_space<vmem>>, vector<8x128xf32>,
    %c144_105 = arith.constant 144 : index
    %c128_106 = arith.constant 128 : index
    %164 = vector.load %arg7[%c144_105, %c128_106] : memref<216x768xf32, #tpu.memory_space<vmem>>, vector<8x128xf32>
    tpu.vector_store %arg7[%c144_105, %c128_106], %161 {strides = array<i32>} : memref<216x768xf32, #tpu.memory_space<vmem>>, vector<8x128xf32>,
    %165 = vector.extract_strided_slice %161 {offsets = [0, 1], sizes = [8, 127], strides = [1, 1]} : vector<8x128xf32> to vector<8x127xf32>
    %166 = vector.extract_strided_slice %161 {offsets = [0, 0], sizes = [8, 1], strides = [1, 1]} : vector<8x128xf32> to vector<8x1xf32>
    %167 = tpu.concatenate %165, %166 in 1 : vector<8x127xf32>, vector<8x1xf32> -> vector<8x128xf32>
    %c8_107 = arith.constant 8 : index
    %c384_108 = arith.constant 384 : index
    %168 = vector.load %arg7[%c8_107, %c384_108] : memref<216x768xf32, #tpu.memory_space<vmem>>, vector<8x128xf32>
    tpu.vector_store %arg7[%c8_107, %c384_108], %167 {strides = array<i32>} : memref<216x768xf32, #tpu.memory_space<vmem>>, vector<8x128xf32>,
    %c80_109 = arith.constant 80 : index
    %c256_110 = arith.constant 256 : index
    %169 = vector.load %arg7[%c80_109, %c256_110] : memref<216x768xf32, #tpu.memory_space<vmem>>, vector<8x128xf32>
    tpu.vector_store %arg7[%c80_109, %c256_110], %167 {strides = array<i32>} : memref<216x768xf32, #tpu.memory_space<vmem>>, vector<8x128xf32>,
    %c152_111 = arith.constant 152 : index
    %c128_112 = arith.constant 128 : index
    %170 = vector.load %arg7[%c152_111, %c128_112] : memref<216x768xf32, #tpu.memory_space<vmem>>, vector<8x128xf32>
    tpu.vector_store %arg7[%c152_111, %c128_112], %167 {strides = array<i32>} : memref<216x768xf32, #tpu.memory_space<vmem>>, vector<8x128xf32>,
    %171 = vector.extract_strided_slice %161 {offsets = [0, 2], sizes = [8, 126], strides = [1, 1]} : vector<8x128xf32> to vector<8x126xf32>
    %172 = vector.extract_strided_slice %161 {offsets = [0, 0], sizes = [8, 2], strides = [1, 1]} : vector<8x128xf32> to vector<8x2xf32>
    %173 = tpu.concatenate %171, %172 in 1 : vector<8x126xf32>, vector<8x2xf32> -> vector<8x128xf32>
    %c16_113 = arith.constant 16 : index
    %c384_114 = arith.constant 384 : index
    %174 = vector.load %arg7[%c16_113, %c384_114] : memref<216x768xf32, #tpu.memory_space<vmem>>, vector<8x128xf32>
    tpu.vector_store %arg7[%c16_113, %c384_114], %173 {strides = array<i32>} : memref<216x768xf32, #tpu.memory_space<vmem>>, vector<8x128xf32>,
    %c88_115 = arith.constant 88 : index
    %c256_116 = arith.constant 256 : index
    %175 = vector.load %arg7[%c88_115, %c256_116] : memref<216x768xf32, #tpu.memory_space<vmem>>, vector<8x128xf32>
    tpu.vector_store %arg7[%c88_115, %c256_116], %173 {strides = array<i32>} : memref<216x768xf32, #tpu.memory_space<vmem>>, vector<8x128xf32>,
    %c160_117 = arith.constant 160 : index
    %c128_118 = arith.constant 128 : index
    %176 = vector.load %arg7[%c160_117, %c128_118] : memref<216x768xf32, #tpu.memory_space<vmem>>, vector<8x128xf32>
    tpu.vector_store %arg7[%c160_117, %c128_118], %173 {strides = array<i32>} : memref<216x768xf32, #tpu.memory_space<vmem>>, vector<8x128xf32>,
    %177 = vector.extract_strided_slice %161 {offsets = [0, 8], sizes = [8, 120], strides = [1, 1]} : vector<8x128xf32> to vector<8x120xf32>
    %178 = vector.extract_strided_slice %161 {offsets = [0, 0], sizes = [8, 8], strides = [1, 1]} : vector<8x128xf32> to vector<8x8xf32>
    %179 = tpu.concatenate %177, %178 in 1 : vector<8x120xf32>, vector<8x8xf32> -> vector<8x128xf32>
    %c24_119 = arith.constant 24 : index
    %c384_120 = arith.constant 384 : index
    %180 = vector.load %arg7[%c24_119, %c384_120] : memref<216x768xf32, #tpu.memory_space<vmem>>, vector<8x128xf32>
    tpu.vector_store %arg7[%c24_119, %c384_120], %179 {strides = array<i32>} : memref<216x768xf32, #tpu.memory_space<vmem>>, vector<8x128xf32>,
    %c96_121 = arith.constant 96 : index
    %c256_122 = arith.constant 256 : index
    %181 = vector.load %arg7[%c96_121, %c256_122] : memref<216x768xf32, #tpu.memory_space<vmem>>, vector<8x128xf32>
    tpu.vector_store %arg7[%c96_121, %c256_122], %179 {strides = array<i32>} : memref<216x768xf32, #tpu.memory_space<vmem>>, vector<8x128xf32>,
    %c168_123 = arith.constant 168 : index
    %c128_124 = arith.constant 128 : index
    %182 = vector.load %arg7[%c168_123, %c128_124] : memref<216x768xf32, #tpu.memory_space<vmem>>, vector<8x128xf32>
    tpu.vector_store %arg7[%c168_123, %c128_124], %179 {strides = array<i32>} : memref<216x768xf32, #tpu.memory_space<vmem>>, vector<8x128xf32>,
    %183 = vector.extract_strided_slice %161 {offsets = [0, 9], sizes = [8, 119], strides = [1, 1]} : vector<8x128xf32> to vector<8x119xf32>
    %184 = vector.extract_strided_slice %161 {offsets = [0, 0], sizes = [8, 9], strides = [1, 1]} : vector<8x128xf32> to vector<8x9xf32>
    %185 = tpu.concatenate %183, %184 in 1 : vector<8x119xf32>, vector<8x9xf32> -> vector<8x128xf32>
    %c32_125 = arith.constant 32 : index
    %c384_126 = arith.constant 384 : index
    %186 = vector.load %arg7[%c32_125, %c384_126] : memref<216x768xf32, #tpu.memory_space<vmem>>, vector<8x128xf32>
    tpu.vector_store %arg7[%c32_125, %c384_126], %185 {strides = array<i32>} : memref<216x768xf32, #tpu.memory_space<vmem>>, vector<8x128xf32>,
    %c104_127 = arith.constant 104 : index
    %c256_128 = arith.constant 256 : index
    %187 = vector.load %arg7[%c104_127, %c256_128] : memref<216x768xf32, #tpu.memory_space<vmem>>, vector<8x128xf32>
    tpu.vector_store %arg7[%c104_127, %c256_128], %185 {strides = array<i32>} : memref<216x768xf32, #tpu.memory_space<vmem>>, vector<8x128xf32>,
    %c176_129 = arith.constant 176 : index
    %c128_130 = arith.constant 128 : index
    %188 = vector.load %arg7[%c176_129, %c128_130] : memref<216x768xf32, #tpu.memory_space<vmem>>, vector<8x128xf32>
    tpu.vector_store %arg7[%c176_129, %c128_130], %185 {strides = array<i32>} : memref<216x768xf32, #tpu.memory_space<vmem>>, vector<8x128xf32>,
    %189 = vector.extract_strided_slice %161 {offsets = [0, 10], sizes = [8, 118], strides = [1, 1]} : vector<8x128xf32> to vector<8x118xf32>
    %190 = vector.extract_strided_slice %161 {offsets = [0, 0], sizes = [8, 10], strides = [1, 1]} : vector<8x128xf32> to vector<8x10xf32>
    %191 = tpu.concatenate %189, %190 in 1 : vector<8x118xf32>, vector<8x10xf32> -> vector<8x128xf32>
    %c40_131 = arith.constant 40 : index
    %c384_132 = arith.constant 384 : index
    %192 = vector.load %arg7[%c40_131, %c384_132] : memref<216x768xf32, #tpu.memory_space<vmem>>, vector<8x128xf32>
    tpu.vector_store %arg7[%c40_131, %c384_132], %191 {strides = array<i32>} : memref<216x768xf32, #tpu.memory_space<vmem>>, vector<8x128xf32>,
    %c112_133 = arith.constant 112 : index
    %c256_134 = arith.constant 256 : index
    %193 = vector.load %arg7[%c112_133, %c256_134] : memref<216x768xf32, #tpu.memory_space<vmem>>, vector<8x128xf32>
    tpu.vector_store %arg7[%c112_133, %c256_134], %191 {strides = array<i32>} : memref<216x768xf32, #tpu.memory_space<vmem>>, vector<8x128xf32>,
    %c184_135 = arith.constant 184 : index
    %c128_136 = arith.constant 128 : index
    %194 = vector.load %arg7[%c184_135, %c128_136] : memref<216x768xf32, #tpu.memory_space<vmem>>, vector<8x128xf32>
    tpu.vector_store %arg7[%c184_135, %c128_136], %191 {strides = array<i32>} : memref<216x768xf32, #tpu.memory_space<vmem>>, vector<8x128xf32>,
    %195 = vector.extract_strided_slice %161 {offsets = [0, 16], sizes = [8, 112], strides = [1, 1]} : vector<8x128xf32> to vector<8x112xf32>
    %196 = vector.extract_strided_slice %161 {offsets = [0, 0], sizes = [8, 16], strides = [1, 1]} : vector<8x128xf32> to vector<8x16xf32>
    %197 = tpu.concatenate %195, %196 in 1 : vector<8x112xf32>, vector<8x16xf32> -> vector<8x128xf32>
    %c48_137 = arith.constant 48 : index
    %c384_138 = arith.constant 384 : index
    %198 = vector.load %arg7[%c48_137, %c384_138] : memref<216x768xf32, #tpu.memory_space<vmem>>, vector<8x128xf32>
    tpu.vector_store %arg7[%c48_137, %c384_138], %197 {strides = array<i32>} : memref<216x768xf32, #tpu.memory_space<vmem>>, vector<8x128xf32>,
    %c120_139 = arith.constant 120 : index
    %c256_140 = arith.constant 256 : index
    %199 = vector.load %arg7[%c120_139, %c256_140] : memref<216x768xf32, #tpu.memory_space<vmem>>, vector<8x128xf32>
    tpu.vector_store %arg7[%c120_139, %c256_140], %197 {strides = array<i32>} : memref<216x768xf32, #tpu.memory_space<vmem>>, vector<8x128xf32>,
    %c192_141 = arith.constant 192 : index
    %c128_142 = arith.constant 128 : index
    %200 = vector.load %arg7[%c192_141, %c128_142] : memref<216x768xf32, #tpu.memory_space<vmem>>, vector<8x128xf32>
    tpu.vector_store %arg7[%c192_141, %c128_142], %197 {strides = array<i32>} : memref<216x768xf32, #tpu.memory_space<vmem>>, vector<8x128xf32>,
    %201 = vector.extract_strided_slice %161 {offsets = [0, 17], sizes = [8, 111], strides = [1, 1]} : vector<8x128xf32> to vector<8x111xf32>
    %202 = vector.extract_strided_slice %161 {offsets = [0, 0], sizes = [8, 17], strides = [1, 1]} : vector<8x128xf32> to vector<8x17xf32>
    %203 = tpu.concatenate %201, %202 in 1 : vector<8x111xf32>, vector<8x17xf32> -> vector<8x128xf32>
    %c56_143 = arith.constant 56 : index
    %c384_144 = arith.constant 384 : index
    %204 = vector.load %arg7[%c56_143, %c384_144] : memref<216x768xf32, #tpu.memory_space<vmem>>, vector<8x128xf32>
    tpu.vector_store %arg7[%c56_143, %c384_144], %203 {strides = array<i32>} : memref<216x768xf32, #tpu.memory_space<vmem>>, vector<8x128xf32>,
    %c128_145 = arith.constant 128 : index
    %c256_146 = arith.constant 256 : index
    %205 = vector.load %arg7[%c128_145, %c256_146] : memref<216x768xf32, #tpu.memory_space<vmem>>, vector<8x128xf32>
    tpu.vector_store %arg7[%c128_145, %c256_146], %203 {strides = array<i32>} : memref<216x768xf32, #tpu.memory_space<vmem>>, vector<8x128xf32>,
    %c200_147 = arith.constant 200 : index
    %c128_148 = arith.constant 128 : index
    %206 = vector.load %arg7[%c200_147, %c128_148] : memref<216x768xf32, #tpu.memory_space<vmem>>, vector<8x128xf32>
    tpu.vector_store %arg7[%c200_147, %c128_148], %203 {strides = array<i32>} : memref<216x768xf32, #tpu.memory_space<vmem>>, vector<8x128xf32>,
    %207 = vector.extract_strided_slice %161 {offsets = [0, 18], sizes = [8, 110], strides = [1, 1]} : vector<8x128xf32> to vector<8x110xf32>
    %208 = vector.extract_strided_slice %161 {offsets = [0, 0], sizes = [8, 18], strides = [1, 1]} : vector<8x128xf32> to vector<8x18xf32>
    %209 = tpu.concatenate %207, %208 in 1 : vector<8x110xf32>, vector<8x18xf32> -> vector<8x128xf32>
    %c64_149 = arith.constant 64 : index
    %c384_150 = arith.constant 384 : index
    %210 = vector.load %arg7[%c64_149, %c384_150] : memref<216x768xf32, #tpu.memory_space<vmem>>, vector<8x128xf32>
    tpu.vector_store %arg7[%c64_149, %c384_150], %209 {strides = array<i32>} : memref<216x768xf32, #tpu.memory_space<vmem>>, vector<8x128xf32>,
    %c136_151 = arith.constant 136 : index
    %c256_152 = arith.constant 256 : index
    %211 = vector.load %arg7[%c136_151, %c256_152] : memref<216x768xf32, #tpu.memory_space<vmem>>, vector<8x128xf32>
    tpu.vector_store %arg7[%c136_151, %c256_152], %209 {strides = array<i32>} : memref<216x768xf32, #tpu.memory_space<vmem>>, vector<8x128xf32>,
    %c208_153 = arith.constant 208 : index
    %c128_154 = arith.constant 128 : index
    %212 = vector.load %arg7[%c208_153, %c128_154] : memref<216x768xf32, #tpu.memory_space<vmem>>, vector<8x128xf32>
    tpu.vector_store %arg7[%c208_153, %c128_154], %209 {strides = array<i32>} : memref<216x768xf32, #tpu.memory_space<vmem>>, vector<8x128xf32>,
    %213 = arith.index_cast %9 : i32 to index
    %c4 = arith.constant 4 : index
    %c0_155 = arith.constant 0 : index
    %c0_156 = arith.constant 0 : index
    %214 = vector.load %arg6[%213, %c4, %c0_155, %c0_156] : memref<2x8x8x128xf32, #tpu.memory_space<vmem>>, vector<1x1x8x128xf32>
    %215 = vector.shape_cast %214 : vector<1x1x8x128xf32> to vector<8x128xf32>
    %c0_157 = arith.constant 0 : index
    %c512 = arith.constant 512 : index
    %216 = vector.load %arg7[%c0_157, %c512] : memref<216x768xf32, #tpu.memory_space<vmem>>, vector<8x128xf32>
    tpu.vector_store %arg7[%c0_157, %c512], %215 {strides = array<i32>} : memref<216x768xf32, #tpu.memory_space<vmem>>, vector<8x128xf32>,
    %c72_158 = arith.constant 72 : index
    %c384_159 = arith.constant 384 : index
    %217 = vector.load %arg7[%c72_158, %c384_159] : memref<216x768xf32, #tpu.memory_space<vmem>>, vector<8x128xf32>
    tpu.vector_store %arg7[%c72_158, %c384_159], %215 {strides = array<i32>} : memref<216x768xf32, #tpu.memory_space<vmem>>, vector<8x128xf32>,
    %c144_160 = arith.constant 144 : index
    %c256_161 = arith.constant 256 : index
    %218 = vector.load %arg7[%c144_160, %c256_161] : memref<216x768xf32, #tpu.memory_space<vmem>>, vector<8x128xf32>
    tpu.vector_store %arg7[%c144_160, %c256_161], %215 {strides = array<i32>} : memref<216x768xf32, #tpu.memory_space<vmem>>, vector<8x128xf32>,
    %219 = vector.extract_strided_slice %215 {offsets = [0, 1], sizes = [8, 127], strides = [1, 1]} : vector<8x128xf32> to vector<8x127xf32>
    %220 = vector.extract_strided_slice %215 {offsets = [0, 0], sizes = [8, 1], strides = [1, 1]} : vector<8x128xf32> to vector<8x1xf32>
    %221 = tpu.concatenate %219, %220 in 1 : vector<8x127xf32>, vector<8x1xf32> -> vector<8x128xf32>
    %c8_162 = arith.constant 8 : index
    %c512_163 = arith.constant 512 : index
    %222 = vector.load %arg7[%c8_162, %c512_163] : memref<216x768xf32, #tpu.memory_space<vmem>>, vector<8x128xf32>
    tpu.vector_store %arg7[%c8_162, %c512_163], %221 {strides = array<i32>} : memref<216x768xf32, #tpu.memory_space<vmem>>, vector<8x128xf32>,
    %c80_164 = arith.constant 80 : index
    %c384_165 = arith.constant 384 : index
    %223 = vector.load %arg7[%c80_164, %c384_165] : memref<216x768xf32, #tpu.memory_space<vmem>>, vector<8x128xf32>
    tpu.vector_store %arg7[%c80_164, %c384_165], %221 {strides = array<i32>} : memref<216x768xf32, #tpu.memory_space<vmem>>, vector<8x128xf32>,
    %c152_166 = arith.constant 152 : index
    %c256_167 = arith.constant 256 : index
    %224 = vector.load %arg7[%c152_166, %c256_167] : memref<216x768xf32, #tpu.memory_space<vmem>>, vector<8x128xf32>
    tpu.vector_store %arg7[%c152_166, %c256_167], %221 {strides = array<i32>} : memref<216x768xf32, #tpu.memory_space<vmem>>, vector<8x128xf32>,
    %225 = vector.extract_strided_slice %215 {offsets = [0, 2], sizes = [8, 126], strides = [1, 1]} : vector<8x128xf32> to vector<8x126xf32>
    %226 = vector.extract_strided_slice %215 {offsets = [0, 0], sizes = [8, 2], strides = [1, 1]} : vector<8x128xf32> to vector<8x2xf32>
    %227 = tpu.concatenate %225, %226 in 1 : vector<8x126xf32>, vector<8x2xf32> -> vector<8x128xf32>
    %c16_168 = arith.constant 16 : index
    %c512_169 = arith.constant 512 : index
    %228 = vector.load %arg7[%c16_168, %c512_169] : memref<216x768xf32, #tpu.memory_space<vmem>>, vector<8x128xf32>
    tpu.vector_store %arg7[%c16_168, %c512_169], %227 {strides = array<i32>} : memref<216x768xf32, #tpu.memory_space<vmem>>, vector<8x128xf32>,
    %c88_170 = arith.constant 88 : index
    %c384_171 = arith.constant 384 : index
    %229 = vector.load %arg7[%c88_170, %c384_171] : memref<216x768xf32, #tpu.memory_space<vmem>>, vector<8x128xf32>
    tpu.vector_store %arg7[%c88_170, %c384_171], %227 {strides = array<i32>} : memref<216x768xf32, #tpu.memory_space<vmem>>, vector<8x128xf32>,
    %c160_172 = arith.constant 160 : index
    %c256_173 = arith.constant 256 : index
    %230 = vector.load %arg7[%c160_172, %c256_173] : memref<216x768xf32, #tpu.memory_space<vmem>>, vector<8x128xf32>
    tpu.vector_store %arg7[%c160_172, %c256_173], %227 {strides = array<i32>} : memref<216x768xf32, #tpu.memory_space<vmem>>, vector<8x128xf32>,
    %231 = vector.extract_strided_slice %215 {offsets = [0, 8], sizes = [8, 120], strides = [1, 1]} : vector<8x128xf32> to vector<8x120xf32>
    %232 = vector.extract_strided_slice %215 {offsets = [0, 0], sizes = [8, 8], strides = [1, 1]} : vector<8x128xf32> to vector<8x8xf32>
    %233 = tpu.concatenate %231, %232 in 1 : vector<8x120xf32>, vector<8x8xf32> -> vector<8x128xf32>
    %c24_174 = arith.constant 24 : index
    %c512_175 = arith.constant 512 : index
    %234 = vector.load %arg7[%c24_174, %c512_175] : memref<216x768xf32, #tpu.memory_space<vmem>>, vector<8x128xf32>
    tpu.vector_store %arg7[%c24_174, %c512_175], %233 {strides = array<i32>} : memref<216x768xf32, #tpu.memory_space<vmem>>, vector<8x128xf32>,
    %c96_176 = arith.constant 96 : index
    %c384_177 = arith.constant 384 : index
    %235 = vector.load %arg7[%c96_176, %c384_177] : memref<216x768xf32, #tpu.memory_space<vmem>>, vector<8x128xf32>
    tpu.vector_store %arg7[%c96_176, %c384_177], %233 {strides = array<i32>} : memref<216x768xf32, #tpu.memory_space<vmem>>, vector<8x128xf32>,
    %c168_178 = arith.constant 168 : index
    %c256_179 = arith.constant 256 : index
    %236 = vector.load %arg7[%c168_178, %c256_179] : memref<216x768xf32, #tpu.memory_space<vmem>>, vector<8x128xf32>
    tpu.vector_store %arg7[%c168_178, %c256_179], %233 {strides = array<i32>} : memref<216x768xf32, #tpu.memory_space<vmem>>, vector<8x128xf32>,
    %237 = vector.extract_strided_slice %215 {offsets = [0, 9], sizes = [8, 119], strides = [1, 1]} : vector<8x128xf32> to vector<8x119xf32>
    %238 = vector.extract_strided_slice %215 {offsets = [0, 0], sizes = [8, 9], strides = [1, 1]} : vector<8x128xf32> to vector<8x9xf32>
    %239 = tpu.concatenate %237, %238 in 1 : vector<8x119xf32>, vector<8x9xf32> -> vector<8x128xf32>
    %c32_180 = arith.constant 32 : index
    %c512_181 = arith.constant 512 : index
    %240 = vector.load %arg7[%c32_180, %c512_181] : memref<216x768xf32, #tpu.memory_space<vmem>>, vector<8x128xf32>
    tpu.vector_store %arg7[%c32_180, %c512_181], %239 {strides = array<i32>} : memref<216x768xf32, #tpu.memory_space<vmem>>, vector<8x128xf32>,
    %c104_182 = arith.constant 104 : index
    %c384_183 = arith.constant 384 : index
    %241 = vector.load %arg7[%c104_182, %c384_183] : memref<216x768xf32, #tpu.memory_space<vmem>>, vector<8x128xf32>
    tpu.vector_store %arg7[%c104_182, %c384_183], %239 {strides = array<i32>} : memref<216x768xf32, #tpu.memory_space<vmem>>, vector<8x128xf32>,
    %c176_184 = arith.constant 176 : index
    %c256_185 = arith.constant 256 : index
    %242 = vector.load %arg7[%c176_184, %c256_185] : memref<216x768xf32, #tpu.memory_space<vmem>>, vector<8x128xf32>
    tpu.vector_store %arg7[%c176_184, %c256_185], %239 {strides = array<i32>} : memref<216x768xf32, #tpu.memory_space<vmem>>, vector<8x128xf32>,
    %243 = vector.extract_strided_slice %215 {offsets = [0, 10], sizes = [8, 118], strides = [1, 1]} : vector<8x128xf32> to vector<8x118xf32>
    %244 = vector.extract_strided_slice %215 {offsets = [0, 0], sizes = [8, 10], strides = [1, 1]} : vector<8x128xf32> to vector<8x10xf32>
    %245 = tpu.concatenate %243, %244 in 1 : vector<8x118xf32>, vector<8x10xf32> -> vector<8x128xf32>
    %c40_186 = arith.constant 40 : index
    %c512_187 = arith.constant 512 : index
    %246 = vector.load %arg7[%c40_186, %c512_187] : memref<216x768xf32, #tpu.memory_space<vmem>>, vector<8x128xf32>
    tpu.vector_store %arg7[%c40_186, %c512_187], %245 {strides = array<i32>} : memref<216x768xf32, #tpu.memory_space<vmem>>, vector<8x128xf32>,
    %c112_188 = arith.constant 112 : index
    %c384_189 = arith.constant 384 : index
    %247 = vector.load %arg7[%c112_188, %c384_189] : memref<216x768xf32, #tpu.memory_space<vmem>>, vector<8x128xf32>
    tpu.vector_store %arg7[%c112_188, %c384_189], %245 {strides = array<i32>} : memref<216x768xf32, #tpu.memory_space<vmem>>, vector<8x128xf32>,
    %c184_190 = arith.constant 184 : index
    %c256_191 = arith.constant 256 : index
    %248 = vector.load %arg7[%c184_190, %c256_191] : memref<216x768xf32, #tpu.memory_space<vmem>>, vector<8x128xf32>
    tpu.vector_store %arg7[%c184_190, %c256_191], %245 {strides = array<i32>} : memref<216x768xf32, #tpu.memory_space<vmem>>, vector<8x128xf32>,
    %249 = vector.extract_strided_slice %215 {offsets = [0, 16], sizes = [8, 112], strides = [1, 1]} : vector<8x128xf32> to vector<8x112xf32>
    %250 = vector.extract_strided_slice %215 {offsets = [0, 0], sizes = [8, 16], strides = [1, 1]} : vector<8x128xf32> to vector<8x16xf32>
    %251 = tpu.concatenate %249, %250 in 1 : vector<8x112xf32>, vector<8x16xf32> -> vector<8x128xf32>
    %c48_192 = arith.constant 48 : index
    %c512_193 = arith.constant 512 : index
    %252 = vector.load %arg7[%c48_192, %c512_193] : memref<216x768xf32, #tpu.memory_space<vmem>>, vector<8x128xf32>
    tpu.vector_store %arg7[%c48_192, %c512_193], %251 {strides = array<i32>} : memref<216x768xf32, #tpu.memory_space<vmem>>, vector<8x128xf32>,
    %c120_194 = arith.constant 120 : index
    %c384_195 = arith.constant 384 : index
    %253 = vector.load %arg7[%c120_194, %c384_195] : memref<216x768xf32, #tpu.memory_space<vmem>>, vector<8x128xf32>
    tpu.vector_store %arg7[%c120_194, %c384_195], %251 {strides = array<i32>} : memref<216x768xf32, #tpu.memory_space<vmem>>, vector<8x128xf32>,
    %c192_196 = arith.constant 192 : index
    %c256_197 = arith.constant 256 : index
    %254 = vector.load %arg7[%c192_196, %c256_197] : memref<216x768xf32, #tpu.memory_space<vmem>>, vector<8x128xf32>
    tpu.vector_store %arg7[%c192_196, %c256_197], %251 {strides = array<i32>} : memref<216x768xf32, #tpu.memory_space<vmem>>, vector<8x128xf32>,
    %255 = vector.extract_strided_slice %215 {offsets = [0, 17], sizes = [8, 111], strides = [1, 1]} : vector<8x128xf32> to vector<8x111xf32>
    %256 = vector.extract_strided_slice %215 {offsets = [0, 0], sizes = [8, 17], strides = [1, 1]} : vector<8x128xf32> to vector<8x17xf32>
    %257 = tpu.concatenate %255, %256 in 1 : vector<8x111xf32>, vector<8x17xf32> -> vector<8x128xf32>
    %c56_198 = arith.constant 56 : index
    %c512_199 = arith.constant 512 : index
    %258 = vector.load %arg7[%c56_198, %c512_199] : memref<216x768xf32, #tpu.memory_space<vmem>>, vector<8x128xf32>
    tpu.vector_store %arg7[%c56_198, %c512_199], %257 {strides = array<i32>} : memref<216x768xf32, #tpu.memory_space<vmem>>, vector<8x128xf32>,
    %c128_200 = arith.constant 128 : index
    %c384_201 = arith.constant 384 : index
    %259 = vector.load %arg7[%c128_200, %c384_201] : memref<216x768xf32, #tpu.memory_space<vmem>>, vector<8x128xf32>
    tpu.vector_store %arg7[%c128_200, %c384_201], %257 {strides = array<i32>} : memref<216x768xf32, #tpu.memory_space<vmem>>, vector<8x128xf32>,
    %c200_202 = arith.constant 200 : index
    %c256_203 = arith.constant 256 : index
    %260 = vector.load %arg7[%c200_202, %c256_203] : memref<216x768xf32, #tpu.memory_space<vmem>>, vector<8x128xf32>
    tpu.vector_store %arg7[%c200_202, %c256_203], %257 {strides = array<i32>} : memref<216x768xf32, #tpu.memory_space<vmem>>, vector<8x128xf32>,
    %261 = vector.extract_strided_slice %215 {offsets = [0, 18], sizes = [8, 110], strides = [1, 1]} : vector<8x128xf32> to vector<8x110xf32>
    %262 = vector.extract_strided_slice %215 {offsets = [0, 0], sizes = [8, 18], strides = [1, 1]} : vector<8x128xf32> to vector<8x18xf32>
    %263 = tpu.concatenate %261, %262 in 1 : vector<8x110xf32>, vector<8x18xf32> -> vector<8x128xf32>
    %c64_204 = arith.constant 64 : index
    %c512_205 = arith.constant 512 : index
    %264 = vector.load %arg7[%c64_204, %c512_205] : memref<216x768xf32, #tpu.memory_space<vmem>>, vector<8x128xf32>
    tpu.vector_store %arg7[%c64_204, %c512_205], %263 {strides = array<i32>} : memref<216x768xf32, #tpu.memory_space<vmem>>, vector<8x128xf32>,
    %c136_206 = arith.constant 136 : index
    %c384_207 = arith.constant 384 : index
    %265 = vector.load %arg7[%c136_206, %c384_207] : memref<216x768xf32, #tpu.memory_space<vmem>>, vector<8x128xf32>
    tpu.vector_store %arg7[%c136_206, %c384_207], %263 {strides = array<i32>} : memref<216x768xf32, #tpu.memory_space<vmem>>, vector<8x128xf32>,
    %c208_208 = arith.constant 208 : index
    %c256_209 = arith.constant 256 : index
    %266 = vector.load %arg7[%c208_208, %c256_209] : memref<216x768xf32, #tpu.memory_space<vmem>>, vector<8x128xf32>
    tpu.vector_store %arg7[%c208_208, %c256_209], %263 {strides = array<i32>} : memref<216x768xf32, #tpu.memory_space<vmem>>, vector<8x128xf32>,
    %267 = arith.index_cast %9 : i32 to index
    %c5 = arith.constant 5 : index
    %c0_210 = arith.constant 0 : index
    %c0_211 = arith.constant 0 : index
    %268 = vector.load %arg6[%267, %c5, %c0_210, %c0_211] : memref<2x8x8x128xf32, #tpu.memory_space<vmem>>, vector<1x1x8x128xf32>
    %269 = vector.shape_cast %268 : vector<1x1x8x128xf32> to vector<8x128xf32>
    %c0_212 = arith.constant 0 : index
    %c640 = arith.constant 640 : index
    %270 = vector.load %arg7[%c0_212, %c640] : memref<216x768xf32, #tpu.memory_space<vmem>>, vector<8x128xf32>
    tpu.vector_store %arg7[%c0_212, %c640], %269 {strides = array<i32>} : memref<216x768xf32, #tpu.memory_space<vmem>>, vector<8x128xf32>,
    %c72_213 = arith.constant 72 : index
    %c512_214 = arith.constant 512 : index
    %271 = vector.load %arg7[%c72_213, %c512_214] : memref<216x768xf32, #tpu.memory_space<vmem>>, vector<8x128xf32>
    tpu.vector_store %arg7[%c72_213, %c512_214], %269 {strides = array<i32>} : memref<216x768xf32, #tpu.memory_space<vmem>>, vector<8x128xf32>,
    %c144_215 = arith.constant 144 : index
    %c384_216 = arith.constant 384 : index
    %272 = vector.load %arg7[%c144_215, %c384_216] : memref<216x768xf32, #tpu.memory_space<vmem>>, vector<8x128xf32>
    tpu.vector_store %arg7[%c144_215, %c384_216], %269 {strides = array<i32>} : memref<216x768xf32, #tpu.memory_space<vmem>>, vector<8x128xf32>,
    %273 = vector.extract_strided_slice %269 {offsets = [0, 1], sizes = [8, 127], strides = [1, 1]} : vector<8x128xf32> to vector<8x127xf32>
    %274 = vector.extract_strided_slice %269 {offsets = [0, 0], sizes = [8, 1], strides = [1, 1]} : vector<8x128xf32> to vector<8x1xf32>
    %275 = tpu.concatenate %273, %274 in 1 : vector<8x127xf32>, vector<8x1xf32> -> vector<8x128xf32>
    %c8_217 = arith.constant 8 : index
    %c640_218 = arith.constant 640 : index
    %276 = vector.load %arg7[%c8_217, %c640_218] : memref<216x768xf32, #tpu.memory_space<vmem>>, vector<8x128xf32>
    tpu.vector_store %arg7[%c8_217, %c640_218], %275 {strides = array<i32>} : memref<216x768xf32, #tpu.memory_space<vmem>>, vector<8x128xf32>,
    %c80_219 = arith.constant 80 : index
    %c512_220 = arith.constant 512 : index
    %277 = vector.load %arg7[%c80_219, %c512_220] : memref<216x768xf32, #tpu.memory_space<vmem>>, vector<8x128xf32>
    tpu.vector_store %arg7[%c80_219, %c512_220], %275 {strides = array<i32>} : memref<216x768xf32, #tpu.memory_space<vmem>>, vector<8x128xf32>,
    %c152_221 = arith.constant 152 : index
    %c384_222 = arith.constant 384 : index
    %278 = vector.load %arg7[%c152_221, %c384_222] : memref<216x768xf32, #tpu.memory_space<vmem>>, vector<8x128xf32>
    tpu.vector_store %arg7[%c152_221, %c384_222], %275 {strides = array<i32>} : memref<216x768xf32, #tpu.memory_space<vmem>>, vector<8x128xf32>,
    %279 = vector.extract_strided_slice %269 {offsets = [0, 2], sizes = [8, 126], strides = [1, 1]} : vector<8x128xf32> to vector<8x126xf32>
    %280 = vector.extract_strided_slice %269 {offsets = [0, 0], sizes = [8, 2], strides = [1, 1]} : vector<8x128xf32> to vector<8x2xf32>
    %281 = tpu.concatenate %279, %280 in 1 : vector<8x126xf32>, vector<8x2xf32> -> vector<8x128xf32>
    %c16_223 = arith.constant 16 : index
    %c640_224 = arith.constant 640 : index
    %282 = vector.load %arg7[%c16_223, %c640_224] : memref<216x768xf32, #tpu.memory_space<vmem>>, vector<8x128xf32>
    tpu.vector_store %arg7[%c16_223, %c640_224], %281 {strides = array<i32>} : memref<216x768xf32, #tpu.memory_space<vmem>>, vector<8x128xf32>,
    %c88_225 = arith.constant 88 : index
    %c512_226 = arith.constant 512 : index
    %283 = vector.load %arg7[%c88_225, %c512_226] : memref<216x768xf32, #tpu.memory_space<vmem>>, vector<8x128xf32>
    tpu.vector_store %arg7[%c88_225, %c512_226], %281 {strides = array<i32>} : memref<216x768xf32, #tpu.memory_space<vmem>>, vector<8x128xf32>,
    %c160_227 = arith.constant 160 : index
    %c384_228 = arith.constant 384 : index
    %284 = vector.load %arg7[%c160_227, %c384_228] : memref<216x768xf32, #tpu.memory_space<vmem>>, vector<8x128xf32>
    tpu.vector_store %arg7[%c160_227, %c384_228], %281 {strides = array<i32>} : memref<216x768xf32, #tpu.memory_space<vmem>>, vector<8x128xf32>,
    %285 = vector.extract_strided_slice %269 {offsets = [0, 8], sizes = [8, 120], strides = [1, 1]} : vector<8x128xf32> to vector<8x120xf32>
    %286 = vector.extract_strided_slice %269 {offsets = [0, 0], sizes = [8, 8], strides = [1, 1]} : vector<8x128xf32> to vector<8x8xf32>
    %287 = tpu.concatenate %285, %286 in 1 : vector<8x120xf32>, vector<8x8xf32> -> vector<8x128xf32>
    %c24_229 = arith.constant 24 : index
    %c640_230 = arith.constant 640 : index
    %288 = vector.load %arg7[%c24_229, %c640_230] : memref<216x768xf32, #tpu.memory_space<vmem>>, vector<8x128xf32>
    tpu.vector_store %arg7[%c24_229, %c640_230], %287 {strides = array<i32>} : memref<216x768xf32, #tpu.memory_space<vmem>>, vector<8x128xf32>,
    %c96_231 = arith.constant 96 : index
    %c512_232 = arith.constant 512 : index
    %289 = vector.load %arg7[%c96_231, %c512_232] : memref<216x768xf32, #tpu.memory_space<vmem>>, vector<8x128xf32>
    tpu.vector_store %arg7[%c96_231, %c512_232], %287 {strides = array<i32>} : memref<216x768xf32, #tpu.memory_space<vmem>>, vector<8x128xf32>,
    %c168_233 = arith.constant 168 : index
    %c384_234 = arith.constant 384 : index
    %290 = vector.load %arg7[%c168_233, %c384_234] : memref<216x768xf32, #tpu.memory_space<vmem>>, vector<8x128xf32>
    tpu.vector_store %arg7[%c168_233, %c384_234], %287 {strides = array<i32>} : memref<216x768xf32, #tpu.memory_space<vmem>>, vector<8x128xf32>,
    %291 = vector.extract_strided_slice %269 {offsets = [0, 9], sizes = [8, 119], strides = [1, 1]} : vector<8x128xf32> to vector<8x119xf32>
    %292 = vector.extract_strided_slice %269 {offsets = [0, 0], sizes = [8, 9], strides = [1, 1]} : vector<8x128xf32> to vector<8x9xf32>
    %293 = tpu.concatenate %291, %292 in 1 : vector<8x119xf32>, vector<8x9xf32> -> vector<8x128xf32>
    %c32_235 = arith.constant 32 : index
    %c640_236 = arith.constant 640 : index
    %294 = vector.load %arg7[%c32_235, %c640_236] : memref<216x768xf32, #tpu.memory_space<vmem>>, vector<8x128xf32>
    tpu.vector_store %arg7[%c32_235, %c640_236], %293 {strides = array<i32>} : memref<216x768xf32, #tpu.memory_space<vmem>>, vector<8x128xf32>,
    %c104_237 = arith.constant 104 : index
    %c512_238 = arith.constant 512 : index
    %295 = vector.load %arg7[%c104_237, %c512_238] : memref<216x768xf32, #tpu.memory_space<vmem>>, vector<8x128xf32>
    tpu.vector_store %arg7[%c104_237, %c512_238], %293 {strides = array<i32>} : memref<216x768xf32, #tpu.memory_space<vmem>>, vector<8x128xf32>,
    %c176_239 = arith.constant 176 : index
    %c384_240 = arith.constant 384 : index
    %296 = vector.load %arg7[%c176_239, %c384_240] : memref<216x768xf32, #tpu.memory_space<vmem>>, vector<8x128xf32>
    tpu.vector_store %arg7[%c176_239, %c384_240], %293 {strides = array<i32>} : memref<216x768xf32, #tpu.memory_space<vmem>>, vector<8x128xf32>,
    %297 = vector.extract_strided_slice %269 {offsets = [0, 10], sizes = [8, 118], strides = [1, 1]} : vector<8x128xf32> to vector<8x118xf32>
    %298 = vector.extract_strided_slice %269 {offsets = [0, 0], sizes = [8, 10], strides = [1, 1]} : vector<8x128xf32> to vector<8x10xf32>
    %299 = tpu.concatenate %297, %298 in 1 : vector<8x118xf32>, vector<8x10xf32> -> vector<8x128xf32>
    %c40_241 = arith.constant 40 : index
    %c640_242 = arith.constant 640 : index
    %300 = vector.load %arg7[%c40_241, %c640_242] : memref<216x768xf32, #tpu.memory_space<vmem>>, vector<8x128xf32>
    tpu.vector_store %arg7[%c40_241, %c640_242], %299 {strides = array<i32>} : memref<216x768xf32, #tpu.memory_space<vmem>>, vector<8x128xf32>,
    %c112_243 = arith.constant 112 : index
    %c512_244 = arith.constant 512 : index
    %301 = vector.load %arg7[%c112_243, %c512_244] : memref<216x768xf32, #tpu.memory_space<vmem>>, vector<8x128xf32>
    tpu.vector_store %arg7[%c112_243, %c512_244], %299 {strides = array<i32>} : memref<216x768xf32, #tpu.memory_space<vmem>>, vector<8x128xf32>,
    %c184_245 = arith.constant 184 : index
    %c384_246 = arith.constant 384 : index
    %302 = vector.load %arg7[%c184_245, %c384_246] : memref<216x768xf32, #tpu.memory_space<vmem>>, vector<8x128xf32>
    tpu.vector_store %arg7[%c184_245, %c384_246], %299 {strides = array<i32>} : memref<216x768xf32, #tpu.memory_space<vmem>>, vector<8x128xf32>,
    %303 = vector.extract_strided_slice %269 {offsets = [0, 16], sizes = [8, 112], strides = [1, 1]} : vector<8x128xf32> to vector<8x112xf32>
    %304 = vector.extract_strided_slice %269 {offsets = [0, 0], sizes = [8, 16], strides = [1, 1]} : vector<8x128xf32> to vector<8x16xf32>
    %305 = tpu.concatenate %303, %304 in 1 : vector<8x112xf32>, vector<8x16xf32> -> vector<8x128xf32>
    %c48_247 = arith.constant 48 : index
    %c640_248 = arith.constant 640 : index
    %306 = vector.load %arg7[%c48_247, %c640_248] : memref<216x768xf32, #tpu.memory_space<vmem>>, vector<8x128xf32>
    tpu.vector_store %arg7[%c48_247, %c640_248], %305 {strides = array<i32>} : memref<216x768xf32, #tpu.memory_space<vmem>>, vector<8x128xf32>,
    %c120_249 = arith.constant 120 : index
    %c512_250 = arith.constant 512 : index
    %307 = vector.load %arg7[%c120_249, %c512_250] : memref<216x768xf32, #tpu.memory_space<vmem>>, vector<8x128xf32>
    tpu.vector_store %arg7[%c120_249, %c512_250], %305 {strides = array<i32>} : memref<216x768xf32, #tpu.memory_space<vmem>>, vector<8x128xf32>,
    %c192_251 = arith.constant 192 : index
    %c384_252 = arith.constant 384 : index
    %308 = vector.load %arg7[%c192_251, %c384_252] : memref<216x768xf32, #tpu.memory_space<vmem>>, vector<8x128xf32>
    tpu.vector_store %arg7[%c192_251, %c384_252], %305 {strides = array<i32>} : memref<216x768xf32, #tpu.memory_space<vmem>>, vector<8x128xf32>,
    %309 = vector.extract_strided_slice %269 {offsets = [0, 17], sizes = [8, 111], strides = [1, 1]} : vector<8x128xf32> to vector<8x111xf32>
    %310 = vector.extract_strided_slice %269 {offsets = [0, 0], sizes = [8, 17], strides = [1, 1]} : vector<8x128xf32> to vector<8x17xf32>
    %311 = tpu.concatenate %309, %310 in 1 : vector<8x111xf32>, vector<8x17xf32> -> vector<8x128xf32>
    %c56_253 = arith.constant 56 : index
    %c640_254 = arith.constant 640 : index
    %312 = vector.load %arg7[%c56_253, %c640_254] : memref<216x768xf32, #tpu.memory_space<vmem>>, vector<8x128xf32>
    tpu.vector_store %arg7[%c56_253, %c640_254], %311 {strides = array<i32>} : memref<216x768xf32, #tpu.memory_space<vmem>>, vector<8x128xf32>,
    %c128_255 = arith.constant 128 : index
    %c512_256 = arith.constant 512 : index
    %313 = vector.load %arg7[%c128_255, %c512_256] : memref<216x768xf32, #tpu.memory_space<vmem>>, vector<8x128xf32>
    tpu.vector_store %arg7[%c128_255, %c512_256], %311 {strides = array<i32>} : memref<216x768xf32, #tpu.memory_space<vmem>>, vector<8x128xf32>,
    %c200_257 = arith.constant 200 : index
    %c384_258 = arith.constant 384 : index
    %314 = vector.load %arg7[%c200_257, %c384_258] : memref<216x768xf32, #tpu.memory_space<vmem>>, vector<8x128xf32>
    tpu.vector_store %arg7[%c200_257, %c384_258], %311 {strides = array<i32>} : memref<216x768xf32, #tpu.memory_space<vmem>>, vector<8x128xf32>,
    %315 = vector.extract_strided_slice %269 {offsets = [0, 18], sizes = [8, 110], strides = [1, 1]} : vector<8x128xf32> to vector<8x110xf32>
    %316 = vector.extract_strided_slice %269 {offsets = [0, 0], sizes = [8, 18], strides = [1, 1]} : vector<8x128xf32> to vector<8x18xf32>
    %317 = tpu.concatenate %315, %316 in 1 : vector<8x110xf32>, vector<8x18xf32> -> vector<8x128xf32>
    %c64_259 = arith.constant 64 : index
    %c640_260 = arith.constant 640 : index
    %318 = vector.load %arg7[%c64_259, %c640_260] : memref<216x768xf32, #tpu.memory_space<vmem>>, vector<8x128xf32>
    tpu.vector_store %arg7[%c64_259, %c640_260], %317 {strides = array<i32>} : memref<216x768xf32, #tpu.memory_space<vmem>>, vector<8x128xf32>,
    %c136_261 = arith.constant 136 : index
    %c512_262 = arith.constant 512 : index
    %319 = vector.load %arg7[%c136_261, %c512_262] : memref<216x768xf32, #tpu.memory_space<vmem>>, vector<8x128xf32>
    tpu.vector_store %arg7[%c136_261, %c512_262], %317 {strides = array<i32>} : memref<216x768xf32, #tpu.memory_space<vmem>>, vector<8x128xf32>,
    %c208_263 = arith.constant 208 : index
    %c384_264 = arith.constant 384 : index
    %320 = vector.load %arg7[%c208_263, %c384_264] : memref<216x768xf32, #tpu.memory_space<vmem>>, vector<8x128xf32>
    tpu.vector_store %arg7[%c208_263, %c384_264], %317 {strides = array<i32>} : memref<216x768xf32, #tpu.memory_space<vmem>>, vector<8x128xf32>,
    %321 = arith.index_cast %9 : i32 to index
    %c6 = arith.constant 6 : index
    %c0_265 = arith.constant 0 : index
    %c0_266 = arith.constant 0 : index
    %322 = vector.load %arg6[%321, %c6, %c0_265, %c0_266] : memref<2x8x8x128xf32, #tpu.memory_space<vmem>>, vector<1x1x8x128xf32>
    %323 = vector.shape_cast %322 : vector<1x1x8x128xf32> to vector<8x128xf32>
    %c72_267 = arith.constant 72 : index
    %c640_268 = arith.constant 640 : index
    %324 = vector.load %arg7[%c72_267, %c640_268] : memref<216x768xf32, #tpu.memory_space<vmem>>, vector<8x128xf32>
    tpu.vector_store %arg7[%c72_267, %c640_268], %323 {strides = array<i32>} : memref<216x768xf32, #tpu.memory_space<vmem>>, vector<8x128xf32>,
    %c144_269 = arith.constant 144 : index
    %c512_270 = arith.constant 512 : index
    %325 = vector.load %arg7[%c144_269, %c512_270] : memref<216x768xf32, #tpu.memory_space<vmem>>, vector<8x128xf32>
    tpu.vector_store %arg7[%c144_269, %c512_270], %323 {strides = array<i32>} : memref<216x768xf32, #tpu.memory_space<vmem>>, vector<8x128xf32>,
    %326 = vector.extract_strided_slice %323 {offsets = [0, 1], sizes = [8, 127], strides = [1, 1]} : vector<8x128xf32> to vector<8x127xf32>
    %327 = vector.extract_strided_slice %323 {offsets = [0, 0], sizes = [8, 1], strides = [1, 1]} : vector<8x128xf32> to vector<8x1xf32>
    %328 = tpu.concatenate %326, %327 in 1 : vector<8x127xf32>, vector<8x1xf32> -> vector<8x128xf32>
    %c80_271 = arith.constant 80 : index
    %c640_272 = arith.constant 640 : index
    %329 = vector.load %arg7[%c80_271, %c640_272] : memref<216x768xf32, #tpu.memory_space<vmem>>, vector<8x128xf32>
    tpu.vector_store %arg7[%c80_271, %c640_272], %328 {strides = array<i32>} : memref<216x768xf32, #tpu.memory_space<vmem>>, vector<8x128xf32>,
    %c152_273 = arith.constant 152 : index
    %c512_274 = arith.constant 512 : index
    %330 = vector.load %arg7[%c152_273, %c512_274] : memref<216x768xf32, #tpu.memory_space<vmem>>, vector<8x128xf32>
    tpu.vector_store %arg7[%c152_273, %c512_274], %328 {strides = array<i32>} : memref<216x768xf32, #tpu.memory_space<vmem>>, vector<8x128xf32>,
    %331 = vector.extract_strided_slice %323 {offsets = [0, 2], sizes = [8, 126], strides = [1, 1]} : vector<8x128xf32> to vector<8x126xf32>
    %332 = vector.extract_strided_slice %323 {offsets = [0, 0], sizes = [8, 2], strides = [1, 1]} : vector<8x128xf32> to vector<8x2xf32>
    %333 = tpu.concatenate %331, %332 in 1 : vector<8x126xf32>, vector<8x2xf32> -> vector<8x128xf32>
    %c88_275 = arith.constant 88 : index
    %c640_276 = arith.constant 640 : index
    %334 = vector.load %arg7[%c88_275, %c640_276] : memref<216x768xf32, #tpu.memory_space<vmem>>, vector<8x128xf32>
    tpu.vector_store %arg7[%c88_275, %c640_276], %333 {strides = array<i32>} : memref<216x768xf32, #tpu.memory_space<vmem>>, vector<8x128xf32>,
    %c160_277 = arith.constant 160 : index
    %c512_278 = arith.constant 512 : index
    %335 = vector.load %arg7[%c160_277, %c512_278] : memref<216x768xf32, #tpu.memory_space<vmem>>, vector<8x128xf32>
    tpu.vector_store %arg7[%c160_277, %c512_278], %333 {strides = array<i32>} : memref<216x768xf32, #tpu.memory_space<vmem>>, vector<8x128xf32>,
    %336 = vector.extract_strided_slice %323 {offsets = [0, 8], sizes = [8, 120], strides = [1, 1]} : vector<8x128xf32> to vector<8x120xf32>
    %337 = vector.extract_strided_slice %323 {offsets = [0, 0], sizes = [8, 8], strides = [1, 1]} : vector<8x128xf32> to vector<8x8xf32>
    %338 = tpu.concatenate %336, %337 in 1 : vector<8x120xf32>, vector<8x8xf32> -> vector<8x128xf32>
    %c96_279 = arith.constant 96 : index
    %c640_280 = arith.constant 640 : index
    %339 = vector.load %arg7[%c96_279, %c640_280] : memref<216x768xf32, #tpu.memory_space<vmem>>, vector<8x128xf32>
    tpu.vector_store %arg7[%c96_279, %c640_280], %338 {strides = array<i32>} : memref<216x768xf32, #tpu.memory_space<vmem>>, vector<8x128xf32>,
    %c168_281 = arith.constant 168 : index
    %c512_282 = arith.constant 512 : index
    %340 = vector.load %arg7[%c168_281, %c512_282] : memref<216x768xf32, #tpu.memory_space<vmem>>, vector<8x128xf32>
    tpu.vector_store %arg7[%c168_281, %c512_282], %338 {strides = array<i32>} : memref<216x768xf32, #tpu.memory_space<vmem>>, vector<8x128xf32>,
    %341 = vector.extract_strided_slice %323 {offsets = [0, 9], sizes = [8, 119], strides = [1, 1]} : vector<8x128xf32> to vector<8x119xf32>
    %342 = vector.extract_strided_slice %323 {offsets = [0, 0], sizes = [8, 9], strides = [1, 1]} : vector<8x128xf32> to vector<8x9xf32>
    %343 = tpu.concatenate %341, %342 in 1 : vector<8x119xf32>, vector<8x9xf32> -> vector<8x128xf32>
    %c104_283 = arith.constant 104 : index
    %c640_284 = arith.constant 640 : index
    %344 = vector.load %arg7[%c104_283, %c640_284] : memref<216x768xf32, #tpu.memory_space<vmem>>, vector<8x128xf32>
    tpu.vector_store %arg7[%c104_283, %c640_284], %343 {strides = array<i32>} : memref<216x768xf32, #tpu.memory_space<vmem>>, vector<8x128xf32>,
    %c176_285 = arith.constant 176 : index
    %c512_286 = arith.constant 512 : index
    %345 = vector.load %arg7[%c176_285, %c512_286] : memref<216x768xf32, #tpu.memory_space<vmem>>, vector<8x128xf32>
    tpu.vector_store %arg7[%c176_285, %c512_286], %343 {strides = array<i32>} : memref<216x768xf32, #tpu.memory_space<vmem>>, vector<8x128xf32>,
    %346 = vector.extract_strided_slice %323 {offsets = [0, 10], sizes = [8, 118], strides = [1, 1]} : vector<8x128xf32> to vector<8x118xf32>
    %347 = vector.extract_strided_slice %323 {offsets = [0, 0], sizes = [8, 10], strides = [1, 1]} : vector<8x128xf32> to vector<8x10xf32>
    %348 = tpu.concatenate %346, %347 in 1 : vector<8x118xf32>, vector<8x10xf32> -> vector<8x128xf32>
    %c112_287 = arith.constant 112 : index
    %c640_288 = arith.constant 640 : index
    %349 = vector.load %arg7[%c112_287, %c640_288] : memref<216x768xf32, #tpu.memory_space<vmem>>, vector<8x128xf32>
    tpu.vector_store %arg7[%c112_287, %c640_288], %348 {strides = array<i32>} : memref<216x768xf32, #tpu.memory_space<vmem>>, vector<8x128xf32>,
    %c184_289 = arith.constant 184 : index
    %c512_290 = arith.constant 512 : index
    %350 = vector.load %arg7[%c184_289, %c512_290] : memref<216x768xf32, #tpu.memory_space<vmem>>, vector<8x128xf32>
    tpu.vector_store %arg7[%c184_289, %c512_290], %348 {strides = array<i32>} : memref<216x768xf32, #tpu.memory_space<vmem>>, vector<8x128xf32>,
    %351 = vector.extract_strided_slice %323 {offsets = [0, 16], sizes = [8, 112], strides = [1, 1]} : vector<8x128xf32> to vector<8x112xf32>
    %352 = vector.extract_strided_slice %323 {offsets = [0, 0], sizes = [8, 16], strides = [1, 1]} : vector<8x128xf32> to vector<8x16xf32>
    %353 = tpu.concatenate %351, %352 in 1 : vector<8x112xf32>, vector<8x16xf32> -> vector<8x128xf32>
    %c120_291 = arith.constant 120 : index
    %c640_292 = arith.constant 640 : index
    %354 = vector.load %arg7[%c120_291, %c640_292] : memref<216x768xf32, #tpu.memory_space<vmem>>, vector<8x128xf32>
    tpu.vector_store %arg7[%c120_291, %c640_292], %353 {strides = array<i32>} : memref<216x768xf32, #tpu.memory_space<vmem>>, vector<8x128xf32>,
    %c192_293 = arith.constant 192 : index
    %c512_294 = arith.constant 512 : index
    %355 = vector.load %arg7[%c192_293, %c512_294] : memref<216x768xf32, #tpu.memory_space<vmem>>, vector<8x128xf32>
    tpu.vector_store %arg7[%c192_293, %c512_294], %353 {strides = array<i32>} : memref<216x768xf32, #tpu.memory_space<vmem>>, vector<8x128xf32>,
    %356 = vector.extract_strided_slice %323 {offsets = [0, 17], sizes = [8, 111], strides = [1, 1]} : vector<8x128xf32> to vector<8x111xf32>
    %357 = vector.extract_strided_slice %323 {offsets = [0, 0], sizes = [8, 17], strides = [1, 1]} : vector<8x128xf32> to vector<8x17xf32>
    %358 = tpu.concatenate %356, %357 in 1 : vector<8x111xf32>, vector<8x17xf32> -> vector<8x128xf32>
    %c128_295 = arith.constant 128 : index
    %c640_296 = arith.constant 640 : index
    %359 = vector.load %arg7[%c128_295, %c640_296] : memref<216x768xf32, #tpu.memory_space<vmem>>, vector<8x128xf32>
    tpu.vector_store %arg7[%c128_295, %c640_296], %358 {strides = array<i32>} : memref<216x768xf32, #tpu.memory_space<vmem>>, vector<8x128xf32>,
    %c200_297 = arith.constant 200 : index
    %c512_298 = arith.constant 512 : index
    %360 = vector.load %arg7[%c200_297, %c512_298] : memref<216x768xf32, #tpu.memory_space<vmem>>, vector<8x128xf32>
    tpu.vector_store %arg7[%c200_297, %c512_298], %358 {strides = array<i32>} : memref<216x768xf32, #tpu.memory_space<vmem>>, vector<8x128xf32>,
    %361 = vector.extract_strided_slice %323 {offsets = [0, 18], sizes = [8, 110], strides = [1, 1]} : vector<8x128xf32> to vector<8x110xf32>
    %362 = vector.extract_strided_slice %323 {offsets = [0, 0], sizes = [8, 18], strides = [1, 1]} : vector<8x128xf32> to vector<8x18xf32>
    %363 = tpu.concatenate %361, %362 in 1 : vector<8x110xf32>, vector<8x18xf32> -> vector<8x128xf32>
    %c136_299 = arith.constant 136 : index
    %c640_300 = arith.constant 640 : index
    %364 = vector.load %arg7[%c136_299, %c640_300] : memref<216x768xf32, #tpu.memory_space<vmem>>, vector<8x128xf32>
    tpu.vector_store %arg7[%c136_299, %c640_300], %363 {strides = array<i32>} : memref<216x768xf32, #tpu.memory_space<vmem>>, vector<8x128xf32>,
    %c208_301 = arith.constant 208 : index
    %c512_302 = arith.constant 512 : index
    %365 = vector.load %arg7[%c208_301, %c512_302] : memref<216x768xf32, #tpu.memory_space<vmem>>, vector<8x128xf32>
    tpu.vector_store %arg7[%c208_301, %c512_302], %363 {strides = array<i32>} : memref<216x768xf32, #tpu.memory_space<vmem>>, vector<8x128xf32>,
    %366 = arith.index_cast %9 : i32 to index
    %c7 = arith.constant 7 : index
    %c0_303 = arith.constant 0 : index
    %c0_304 = arith.constant 0 : index
    %367 = vector.load %arg6[%366, %c7, %c0_303, %c0_304] : memref<2x8x8x128xf32, #tpu.memory_space<vmem>>, vector<1x1x8x128xf32>
    %368 = vector.shape_cast %367 : vector<1x1x8x128xf32> to vector<8x128xf32>
    %c144_305 = arith.constant 144 : index
    %c640_306 = arith.constant 640 : index
    %369 = vector.load %arg7[%c144_305, %c640_306] : memref<216x768xf32, #tpu.memory_space<vmem>>, vector<8x128xf32>
    tpu.vector_store %arg7[%c144_305, %c640_306], %368 {strides = array<i32>} : memref<216x768xf32, #tpu.memory_space<vmem>>, vector<8x128xf32>,
    %370 = vector.extract_strided_slice %368 {offsets = [0, 1], sizes = [8, 127], strides = [1, 1]} : vector<8x128xf32> to vector<8x127xf32>
    %371 = vector.extract_strided_slice %368 {offsets = [0, 0], sizes = [8, 1], strides = [1, 1]} : vector<8x128xf32> to vector<8x1xf32>
    %372 = tpu.concatenate %370, %371 in 1 : vector<8x127xf32>, vector<8x1xf32> -> vector<8x128xf32>
    %c152_307 = arith.constant 152 : index
    %c640_308 = arith.constant 640 : index
    %373 = vector.load %arg7[%c152_307, %c640_308] : memref<216x768xf32, #tpu.memory_space<vmem>>, vector<8x128xf32>
    tpu.vector_store %arg7[%c152_307, %c640_308], %372 {strides = array<i32>} : memref<216x768xf32, #tpu.memory_space<vmem>>, vector<8x128xf32>,
    %374 = vector.extract_strided_slice %368 {offsets = [0, 2], sizes = [8, 126], strides = [1, 1]} : vector<8x128xf32> to vector<8x126xf32>
    %375 = vector.extract_strided_slice %368 {offsets = [0, 0], sizes = [8, 2], strides = [1, 1]} : vector<8x128xf32> to vector<8x2xf32>
    %376 = tpu.concatenate %374, %375 in 1 : vector<8x126xf32>, vector<8x2xf32> -> vector<8x128xf32>
    %c160_309 = arith.constant 160 : index
    %c640_310 = arith.constant 640 : index
    %377 = vector.load %arg7[%c160_309, %c640_310] : memref<216x768xf32, #tpu.memory_space<vmem>>, vector<8x128xf32>
    tpu.vector_store %arg7[%c160_309, %c640_310], %376 {strides = array<i32>} : memref<216x768xf32, #tpu.memory_space<vmem>>, vector<8x128xf32>,
    %378 = vector.extract_strided_slice %368 {offsets = [0, 8], sizes = [8, 120], strides = [1, 1]} : vector<8x128xf32> to vector<8x120xf32>
    %379 = vector.extract_strided_slice %368 {offsets = [0, 0], sizes = [8, 8], strides = [1, 1]} : vector<8x128xf32> to vector<8x8xf32>
    %380 = tpu.concatenate %378, %379 in 1 : vector<8x120xf32>, vector<8x8xf32> -> vector<8x128xf32>
    %c168_311 = arith.constant 168 : index
    %c640_312 = arith.constant 640 : index
    %381 = vector.load %arg7[%c168_311, %c640_312] : memref<216x768xf32, #tpu.memory_space<vmem>>, vector<8x128xf32>
    tpu.vector_store %arg7[%c168_311, %c640_312], %380 {strides = array<i32>} : memref<216x768xf32, #tpu.memory_space<vmem>>, vector<8x128xf32>,
    %382 = vector.extract_strided_slice %368 {offsets = [0, 9], sizes = [8, 119], strides = [1, 1]} : vector<8x128xf32> to vector<8x119xf32>
    %383 = vector.extract_strided_slice %368 {offsets = [0, 0], sizes = [8, 9], strides = [1, 1]} : vector<8x128xf32> to vector<8x9xf32>
    %384 = tpu.concatenate %382, %383 in 1 : vector<8x119xf32>, vector<8x9xf32> -> vector<8x128xf32>
    %c176_313 = arith.constant 176 : index
    %c640_314 = arith.constant 640 : index
    %385 = vector.load %arg7[%c176_313, %c640_314] : memref<216x768xf32, #tpu.memory_space<vmem>>, vector<8x128xf32>
    tpu.vector_store %arg7[%c176_313, %c640_314], %384 {strides = array<i32>} : memref<216x768xf32, #tpu.memory_space<vmem>>, vector<8x128xf32>,
    %386 = vector.extract_strided_slice %368 {offsets = [0, 10], sizes = [8, 118], strides = [1, 1]} : vector<8x128xf32> to vector<8x118xf32>
    %387 = vector.extract_strided_slice %368 {offsets = [0, 0], sizes = [8, 10], strides = [1, 1]} : vector<8x128xf32> to vector<8x10xf32>
    %388 = tpu.concatenate %386, %387 in 1 : vector<8x118xf32>, vector<8x10xf32> -> vector<8x128xf32>
    %c184_315 = arith.constant 184 : index
    %c640_316 = arith.constant 640 : index
    %389 = vector.load %arg7[%c184_315, %c640_316] : memref<216x768xf32, #tpu.memory_space<vmem>>, vector<8x128xf32>
    tpu.vector_store %arg7[%c184_315, %c640_316], %388 {strides = array<i32>} : memref<216x768xf32, #tpu.memory_space<vmem>>, vector<8x128xf32>,
    %390 = vector.extract_strided_slice %368 {offsets = [0, 16], sizes = [8, 112], strides = [1, 1]} : vector<8x128xf32> to vector<8x112xf32>
    %391 = vector.extract_strided_slice %368 {offsets = [0, 0], sizes = [8, 16], strides = [1, 1]} : vector<8x128xf32> to vector<8x16xf32>
    %392 = tpu.concatenate %390, %391 in 1 : vector<8x112xf32>, vector<8x16xf32> -> vector<8x128xf32>
    %c192_317 = arith.constant 192 : index
    %c640_318 = arith.constant 640 : index
    %393 = vector.load %arg7[%c192_317, %c640_318] : memref<216x768xf32, #tpu.memory_space<vmem>>, vector<8x128xf32>
    tpu.vector_store %arg7[%c192_317, %c640_318], %392 {strides = array<i32>} : memref<216x768xf32, #tpu.memory_space<vmem>>, vector<8x128xf32>,
    %394 = vector.extract_strided_slice %368 {offsets = [0, 17], sizes = [8, 111], strides = [1, 1]} : vector<8x128xf32> to vector<8x111xf32>
    %395 = vector.extract_strided_slice %368 {offsets = [0, 0], sizes = [8, 17], strides = [1, 1]} : vector<8x128xf32> to vector<8x17xf32>
    %396 = tpu.concatenate %394, %395 in 1 : vector<8x111xf32>, vector<8x17xf32> -> vector<8x128xf32>
    %c200_319 = arith.constant 200 : index
    %c640_320 = arith.constant 640 : index
    %397 = vector.load %arg7[%c200_319, %c640_320] : memref<216x768xf32, #tpu.memory_space<vmem>>, vector<8x128xf32>
    tpu.vector_store %arg7[%c200_319, %c640_320], %396 {strides = array<i32>} : memref<216x768xf32, #tpu.memory_space<vmem>>, vector<8x128xf32>,
    %398 = vector.extract_strided_slice %368 {offsets = [0, 18], sizes = [8, 110], strides = [1, 1]} : vector<8x128xf32> to vector<8x110xf32>
    %399 = vector.extract_strided_slice %368 {offsets = [0, 0], sizes = [8, 18], strides = [1, 1]} : vector<8x128xf32> to vector<8x18xf32>
    %400 = tpu.concatenate %398, %399 in 1 : vector<8x110xf32>, vector<8x18xf32> -> vector<8x128xf32>
    %c208_321 = arith.constant 208 : index
    %c640_322 = arith.constant 640 : index
    %401 = vector.load %arg7[%c208_321, %c640_322] : memref<216x768xf32, #tpu.memory_space<vmem>>, vector<8x128xf32>
    tpu.vector_store %arg7[%c208_321, %c640_322], %400 {strides = array<i32>} : memref<216x768xf32, #tpu.memory_space<vmem>>, vector<8x128xf32>,
    %c0_323 = arith.constant 0 : index
    %c0_324 = arith.constant 0 : index
    %402 = vector.load %arg3[%c0_323, %c0_324] : memref<8x216xf32, #tpu.memory_space<vmem>>, vector<8x216xf32>
    %c0_325 = arith.constant 0 : index
    %c0_326 = arith.constant 0 : index
    %403 = vector.load %arg7[%c0_325, %c0_326] : memref<216x768xf32, #tpu.memory_space<vmem>>, vector<216x768xf32>
    %cst = arith.constant dense<0.000000e+00> : vector<8x768xf32>
    %404 = tpu.matmul %402, %403, %cst {dimension_numbers = #tpu.dot_dimension_numbers<[1], [0], [0], [1], [0, 0, 1, 1], [], []>} : vector<8x216xf32>, vector<216x768xf32>, vector<8x768xf32> -> vector<8x768xf32>
    %c0_327 = arith.constant 0 : index
    %c0_328 = arith.constant 0 : index
    %405 = vector.load %arg4[%c0_327, %c0_328] : memref<8x1xf32, #tpu.memory_space<vmem>>, vector<8x1xf32>
    %406 = vector.broadcast %405 : vector<8x1xf32> to vector<8x768xf32>
    %407 = arith.addf %404, %406 : vector<8x768xf32>
    %cst_329 = arith.constant 0.000000e+00 : f32
    %408 = vector.broadcast %cst_329 : f32 to vector<8x768xf32>
    %409 = arith.maximumf %407, %408 : vector<8x768xf32>
    %c0_330 = arith.constant 0 : index
    %c0_331 = arith.constant 0 : index
    %c0_332 = arith.constant 0 : index
    %410 = vector.load %arg5[%c0_330, %c0_331, %c0_332] : memref<1x8x768xf32, #tpu.memory_space<vmem>>, vector<1x8x768xf32>
    %411 = vector.shape_cast %410 : vector<1x8x768xf32> to vector<8x768xf32>
    %412 = vector.shape_cast %409 : vector<8x768xf32> to vector<1x8x768xf32>
    tpu.vector_store %arg5[%c0_330, %c0_331, %c0_332], %412 {strides = array<i32>} : memref<1x8x768xf32, #tpu.memory_space<vmem>>, vector<1x8x768xf32>,
    return
  }
  func.func @transform_1(%arg0: i32, %arg1: i32) -> (i32, i32) {
    %c0_i32 = arith.constant 0 : i32
    %c0_i32_0 = arith.constant 0 : i32
    %c0_i32_1 = arith.constant 0 : i32
    return %c0_i32, %c0_i32_0 : i32, i32
  }
  func.func @transform_2(%arg0: i32, %arg1: i32) -> (i32, i32) {
    %c0_i32 = arith.constant 0 : i32
    %c0_i32_0 = arith.constant 0 : i32
    %c0_i32_1 = arith.constant 0 : i32
    return %c0_i32, %c0_i32_0 : i32, i32
  }
  func.func @transform_3(%arg0: i32, %arg1: i32) -> (i32, i32, i32) {
    %c0_i32 = arith.constant 0 : i32
    %c0_i32_0 = arith.constant 0 : i32
    return %arg0, %c0_i32, %arg1 : i32, i32, i32
  }
}

</mosaic_0001>

<bundles_post_ra>
// kernel: tpu_custom_call.1
= control target key start
LH: loop header
LB: loop body
LE: loop exit
PB: predicated region body
PF: predicated region fallthrough
CT: control target
= control target key end

     0   :  { %8 = vsyncpa [#allocation6], 0  ;;  %s2044_s0 = inlined_call_operand.hbm [shape: f32[2,8,8,128], index: 0, kind: input, shape index: {}]   ;;  %s2045_s1 = inlined_call_operand.hbm [shape: f32[8,216], index: 1, kind: input, shape index: {}]   ;;  %s2046_s2 = inlined_call_operand.vmem [shape: f32[8,1], index: 2, kind: input, shape index: {}]   ;;  %s2047_s3 = inlined_call_operand.hbm [shape: f32[2,8,768], index: 3, kind: output, shape index: {}]  }
   0x1   :  { %9 = vsyncpa [#allocation7], 0 }
   0x2   :  { %11 = vsyncpa [#allocation7 + $0x1], 0  ;;  %s1571_s12 = smov 0   ;;  %s1573_s13 = smov 0  }
   0x3   :  { %s1575_s14 = smov 0   ;;  %s1577_s15 = smov 0  }
   0x4   :  { %s1579_s16 = smov 0   ;;  %s1581_s17 = smov 0  }
   0x5 LB: > { %s1164_s18 = sadd.s32 4294967295, %s1538_s17   ;;  %s1165_s19 = sadd.s32 4294967294, %s1538_s17   ;;  %s1538_s17 = sphi %s1581_s17, %s17_s17   ;;  %s1534_s16 = sphi %s1579_s16, %s2054_s16   ;;  %s1530_s15 = sphi %s1577_s15, %s2053_s15   ;;  %s1526_s14 = sphi %s1575_s14, %s2052_s14   ;;  %s1522_s13 = sphi %s1573_s13, %s2051_s13   ;;  %s1518_s12 = sphi %s1571_s12, %s2050_s12  }
   0x6   : > { %s29_s20 = sadd.s32 1, %s1534_s16  ;;  %s80_s21 = sadd.s32 1, %s1526_s14 }
   0x7   : > { %p31_p0 = scmp.ge.s32.totalorder %s29_s20, 2  ;;  %p90_p1 = scmp.ne.s32.totalorder %s1526_s14, %s1522_s13 }
   0x8   : > { %p91_p2 = scmp.eq.s32.totalorder %s1164_s18, 1  ;;  %p96_p3 = scmp.ne.s32.totalorder %s1522_s13, %s1518_s12 }
   0x9   : > { %s2056_s20 = smov (%p31_p0, %s29_s20), 0  ;;  %p97_p5 = scmp.eq.s32.totalorder %s1165_s19, 1 }
   0xa   : > { %p1611_p4 = por %p91_p2, %p90_p1  ;;  %s75_s23 = ssub.s32 %s1534_s16, %s2056_s20 }
   0xb   : > { %p1166_p6 = scmp.ge.s32.totalorder %s1538_s17, 1  ;;  %p78_p7 = scmp.eq.s32.totalorder %s75_s23, 0 }
   0xc   : > { %p1618_p8 = por %p97_p5, %p96_p3  ;;  %p104_p9 = scmp.lt.s32.totalorder %s1538_s17, 3 }
   0xd   : > { %s1624_s25 = scalar_select %p78_p7, %s1526_s14, %s80_s21  }
   0xe   : > { %p105_p10 = pnand %p1166_p6, %p104_p9  ;;  %p1206_p11 = scmp.eq.s32.totalorder %s1164_s18, 0 }
   0xf   : > { %s116_s28 = sshll.u32 %s2045_s1, 4  ;;  %s1540_s29 = smov [#allocation5]   ;;  %s117_s28 = int_to_ptr.hbm [resolvable:$true] %s116_s28 }
  0x10   : > { %p1198_p12 = pneg %p105_p10  ;;  %s118_s30 = sshll.u32 %s1540_s29, 4  ;;  %s119_s30 = int_to_ptr.vmem [resolvable:$true] %s118_s30 }
  0x11   : > { %134 = sbr.rel (%p105_p10) target bundleno = 422 (0x1a6), region = 28 }
  0x12   : > { %p1199_p13 = pnand %p1206_p11, %p1198_p12 }
  0x14   : > { %1201 = dma.hbm_to_vmem [thread:$0]  (!%p1199_p13), %s117_s28, 256, %s119_s30, [#allocation6]  }
  0x16   : > { %1507 = dma.done.wait (%p1206_p11), [#allocation6], 256  }
  0x17   : > { %1509 = vsyncadd (%p1206_p11), [#allocation6], 4294967040  ;;  %s149_s4 = sand.u32 1, %s1522_s13   ;;  %s1170_s5 = sshll.u32 %s1530_s15, 6 }
  0x18   : > { %s1190_s6 = smul.u32 48, %s149_s4  ;;  %s170_s9 = scalar_lea.hbm %s2044_s0, %s1170_s5 }
  0x19   : > { %s178_s10 = sshll.u32 %s170_s9, 4  ;;  %s1541_s11 = smov [#allocation2]   ;;  %s179_s10 = int_to_ptr.hbm [resolvable:$true] %s178_s10 }
  0x1a   : > { %s180_s18 = sshll.u32 %s1541_s11, 4  ;;  %s1430_s19 = sshra.s32 %s179_s10, 4  ;;  %s181_s18 = int_to_ptr.vmem [resolvable:$true] %s180_s18  ;;  %s1431_s19 = int_to_ptr.hbm [resolvable:$true] %s1430_s19 }
  0x1b   : > { %s1432_s21 = scalar_lea.hbm %s1431_s19, 64  ;;  %s1434_s27 = scalar_lea.hbm %s2044_s0, 128 }
  0x1c   : > { %p1433_p0 = scmp.ne.s32.totalorder %s1431_s19, %s1432_s21  ;;  %p1435_p1 = scmp.lt.s32.totalorder %s1431_s19, %s2044_s0 }
  0x1d   : > { %p1436_p2 = scmp.lt.s32.totalorder %s1434_s27, %s1432_s21 }
  0x1f   : > { %p1437_p3 = por %p1436_p2, %p1435_p1 }
  0x21   : > { %p1438_p5 = pnand %p1437_p3, %p1433_p0 }
  0x23   : > { %1441 = shalt.err (!%p1438_p5)  }
  0x24   : > { %183 = dma.hbm_to_vmem [thread:$0]  %s179_s10, 1024, %s181_s18, [#allocation4] }
  0x25   : > { %s1642_s30 = scalar_lea.vmem [#allocation8], %s1190_s6 }
  0x26   : > { %1510 = dma.done.wait [#allocation4], 1024 }
  0x27   : > { %1511 = vsyncadd [#allocation4], 4294966272  ;;  %v1644_v0 = vld [vmem:[#allocation2 + $0x10] sm:$0xff]  ;;  %v1646_v1 = vld [vmem:[#allocation2 + $0x18] sm:$0xff]  ;;  %s1542_s5 = smov 119   ;;  %s1543_s7 = smov 112  }
  0x28   : > { %v1278_v2 = vpack.i.bf16 %v1646_v1, %v1644_v0  ;;  %s1544_s8 = smov 126   ;;  %s1545_s6 = smov 120   ;;  %v1655_v3 = vld [vmem:[#allocation2 + $0x8] sm:$0xff]  ;;  %v1660_v5 = vld [vmem:[#allocation2 + $0x20] sm:$0xff]  ;;  %v1678_v10 = vld [vmem:[#allocation2 + $0x30] sm:$0xff]  ;;  %vm772_vm0 = vcmask 719872  }
  0x29   : > { %s1546_s9 = smov 118   ;;  %s1547_s10 = smov 127   ;;  %v1303_v4 = vpack.i.bf16 %v1655_v3, %v1646_v1  ;;  %v1308_v6 = vpack.i.bf16 %v1660_v5, %v1655_v3  ;;  %v1670_v7 = vld [vmem:[#allocation2] sm:$0xff]  ;;  %v1676_v9 = vld [vmem:[#allocation2 + $0x28] sm:$0xff]  ;;  %v1704_v13 = vld [vmem:[#allocation2 + $0x38] sm:$0xff] }
  0x2a   : > { %1279 = vrot.lane.b32.xlu1 %v1278_v2, %s1542_s5  ;;  %1269 = vrot.lane.b32.xlu0 %v1278_v2, %s1543_s7  ;;  %s1548_s11 = smov 111   ;;  %s1549_s18 = smov 110   ;;  %v1338_v8 = vpack.i.bf16 %v1670_v7, %v1644_v0  ;;  %v1348_v11 = vpack.i.bf16 %v1678_v10, %v1676_v9  ;;  %v1353_v12 = vpack.i.bf16 %v1676_v9, %v1660_v5 }
  0x2b   : > { %1289 = vrot.lane.b32.xlu2 %v1278_v2, %s1544_s8  ;;  %v1388_v14 = vpack.i.bf16 %v1704_v13, %v1678_v10  ;;  %s1191_s23 = smul.u32 48, %s1530_s15  ;;  %s1044_s29 = sshll.u32 %s1642_s30, 4  ;;  %s1045_s29 = int_to_ptr.vmem [resolvable:$true] %s1044_s29 }
  0x2d   : > { %s1042_s28 = scalar_lea.hbm %s2047_s3, %s1191_s23 }
  0x32   : > { %1284 = vrot.lane.b32.xlu1 %v1278_v2, %s1545_s6  ;;  %1274 = vrot.lane.b32.xlu0 %v1278_v2, %s1546_s9 }
  0x33   : > { %1294 = vrot.lane.b32.xlu2 %v1278_v2, %s1547_s10 }
  0x3a   : > { %1304 = vrot.lane.b32.xlu1 %v1303_v4, %s1548_s11  ;;  %1299 = vrot.lane.b32.xlu0 %v1303_v4, %s1549_s18 }
  0x3b   : > { %1309 = vrot.lane.b32.xlu2 %v1308_v6, %s1543_s7 }
  0x42   : > { %1319 = vrot.lane.b32.xlu1 %v1308_v6, %s1542_s5  ;;  %1314 = vrot.lane.b32.xlu0 %v1308_v6, %s1546_s9 }
  0x43   : > { %1324 = vrot.lane.b32.xlu2 %v1308_v6, %s1545_s6 }
  0x4a   : > { %1334 = vrot.lane.b32.xlu1 %v1308_v6, %s1547_s10  ;;  %1329 = vrot.lane.b32.xlu0 %v1308_v6, %s1544_s8 }
  0x4b   : > { %1339 = vrot.lane.b32.xlu2 %v1338_v8, %s1549_s18 }
  0x52   : > { %1349 = vrot.lane.b32.xlu1 %v1348_v11, %s1543_s7  ;;  %1344 = vrot.lane.b32.xlu0 %v1338_v8, %s1548_s11 }
  0x53   : > { %1354 = vrot.lane.b32.xlu2 %v1353_v12, %s1549_s18 }
  0x5a   : > { %241 = vrot.lane.b32.xlu1 %v1670_v7, %s1543_s7  ;;  %1359 = vrot.lane.b32.xlu0 %v1348_v11, %s1546_s9 }
  0x5b   : > { %1364 = vrot.lane.b32.xlu2 %v1353_v12, %s1548_s11 }
  0x62   : > { %237 = vrot.lane.b32.xlu1 %v1670_v7, %s1546_s9  ;;  %1369 = vrot.lane.b32.xlu0 %v1348_v11, %s1542_s5 }
  0x63   : > { %1374 = vrot.lane.b32.xlu2 %v1348_v11, %s1545_s6 }
  0x6a   : > { %1379 = vrot.lane.b32.xlu1 %v1348_v11, %s1544_s8  ;;  %233 = vrot.lane.b32.xlu0 %v1670_v7, %s1542_s5 }
  0x6b   : > { %229 = vrot.lane.b32.xlu2 %v1670_v7, %s1545_s6 }
  0x72   : > { %225 = vrot.lane.b32.xlu1 %v1670_v7, %s1544_s8  ;;  %1384 = vrot.lane.b32.xlu0 %v1348_v11, %s1547_s10 }
  0x73   : > { %221 = vrot.lane.b32.xlu2 %v1670_v7, %s1547_s10 }
  0x7a   : > { %1389 = vrot.lane.b32.xlu0 %v1388_v14, %s1549_s18  ;;  %1394 = vrot.lane.b32.xlu1 %v1388_v14, %s1548_s11 }
  0x7b   : > { %590 = vrot.lane.b32.xlu2 %v1704_v13, %s1543_s7  ;;  %s1029_s7 = scalar_lea.sflag [#allocation7], %s149_s4 }
  0x82   : > { %586 = vrot.lane.b32.xlu0 %v1704_v13, %s1546_s9  ;;  %582 = vrot.lane.b32.xlu1 %v1704_v13, %s1542_s5  ;;  %s1046_s5 = sshll.u32 %s1042_s28, 4  ;;  %s1047_s5 = int_to_ptr.hbm [resolvable:$true] %s1046_s5 }
  0x83   : > { %578 = vrot.lane.b32.xlu2 %v1704_v13, %s1545_s6 }
  0x85   : > { %v1290_v15 = vpop.permute.xlu2 %1289 }
  0x86   : > { %v1746_v30 = vunpack.i.l.bf16 %v1290_v15  ;;  %v1787_v48 = vunpack.i.h.bf16 %v1290_v15  ;;  %v1843_v15 = vld [vmem:[#allocation5] sm:$0xff] }
  0x8a   : > { %574 = vrot.lane.b32.xlu0 %v1704_v13, %s1544_s8  ;;  %570 = vrot.lane.b32.xlu1 %v1704_v13, %s1547_s10  ;;  %s1468_s8 = sshra.s32 %s1047_s5, 4  ;;  %s1474_s10 = scalar_lea.hbm %s2047_s3, 96  ;;  %s1469_s8 = int_to_ptr.hbm [resolvable:$true] %s1468_s8 }
  0x8b   : > { %s1470_s15 = scalar_lea.hbm %s1469_s8, 48  ;;  %p1475_p10 = scmp.lt.s32.totalorder %s1469_s8, %s2047_s3 }
  0x8c   : > { %p1471_p6 = scmp.ne.s32.totalorder %s1469_s8, %s1470_s15  ;;  %p1476_p11 = scmp.lt.s32.totalorder %s1474_s10, %s1470_s15 }
  0x8d   : > { %v1295_v16 = vpop.permute.xlu2 %1294 }
  0x8e   : > { %v1753_v33 = vunpack.i.l.bf16 %v1295_v16  ;;  %v1790_v49 = vunpack.i.h.bf16 %v1295_v16  ;;  %p1472_p7 = pnand %p1471_p6, %p1611_p4  ;;  %p1477_p12 = por %p1476_p11, %p1475_p10 }
  0x90   : > { %p1473_p9 = pneg %p1472_p7 }
  0x92   : > { %p1478_p13 = pnand %p1477_p12, %p1473_p9 }
  0x95   : > { %v1724_v17 = vpop.permute.xlu2 %1309 }
  0x96   : > { %v1311_v18 = vunpack.i.l.bf16 %v1724_v17  ;;  %v1824_v4 = vunpack.i.h.bf16 %v1724_v17 }
  0x98   : > { %776 = vmatpush.msra.mxu0 %v1311_v18 }
  0x9c   : > { %v1280_v19 = vpop.permute.xlu1 %1279  ;;  %v1270_v20 = vpop.permute.xlu0 %1269 }
  0x9d   : > { %v1727_v21 = vunpack.i.l.bf16 %v1270_v20  ;;  %v1729_v22 = vpop.permute.xlu2 %1324  ;;  %v1739_v28 = vunpack.i.l.bf16 %v1280_v19  ;;  %v1765_v37 = vunpack.i.h.bf16 %v1270_v20  ;;  %v1780_v44 = vunpack.i.h.bf16 %v1280_v19 }
  0x9e   : > { %v1326_v47 = vunpack.i.l.bf16 %v1729_v22  ;;  %v1850_v17 = vunpack.i.h.bf16 %v1729_v22 }
  0x9f   : > { %816 = vmatpush.msra.mxu2 %v1727_v21 }
  0xa4   : > { %v1285_v23 = vpop.permute.xlu1 %1284  ;;  %v1275_v24 = vpop.permute.xlu0 %1274 }
  0xa5   : > { %v1732_v25 = vunpack.i.l.bf16 %v1275_v24  ;;  %v1734_v26 = vpop.permute.xlu2 %1339  ;;  %v1743_v29 = vunpack.i.l.bf16 %v1285_v23  ;;  %v1769_v38 = vunpack.i.h.bf16 %v1275_v24  ;;  %v1783_v46 = vunpack.i.h.bf16 %v1285_v23 }
  0xa6   : > { %v1737_v27 = vunpack.i.l.bf16 %v1734_v26  ;;  %v1342_v57 = vunpack.i.h.bf16 %v1734_v26 }
  0xa7   : > { %817 = vmatpush.msra.mxu2 %v1732_v25 }
  0xa8   : > { %801 = vmatpush.msra.mxu1 %v1737_v27 }
  0xa9   : > { %818 = vmatpush.msra.mxu2 %v1739_v28 }
  0xab   : > { %819 = vmatpush.msra.mxu2 %v1743_v29 }
  0xac   : > { %v1749_v31 = vpop.permute.xlu1 %1304  ;;  %v1751_v32 = vpop.permute.xlu0 %1299 }
  0xad   : > { %v1756_v34 = vunpack.i.l.bf16 %v1751_v32  ;;  %820 = vmatpush.msra.mxu2 %v1746_v30  ;;  %v1760_v35 = vunpack.i.l.bf16 %v1749_v31  ;;  %v1302_v36 = vunpack.i.h.bf16 %v1751_v32  ;;  %v1307_v39 = vunpack.i.h.bf16 %v1749_v31  ;;  %v1355_v43 = vpop.permute.xlu2 %1354 }
  0xae   : > { %v1794_v55 = vunpack.i.h.bf16 %v1355_v43  ;;  %v1803_v58 = vunpack.i.l.bf16 %v1355_v43 }
  0xaf   : > { %821 = vmatpush.msra.mxu2 %v1753_v33  ;;  %841 = vmatpush.msra.mxu3 %v1756_v34 }
  0xb1   : > { %822 = vmatpush.msra.mxu2 %v1644_v0  ;;  %842 = vmatpush.msra.mxu3 %v1760_v35 }
  0xb3   : > { %823 = vmatpush.msra.mxu2 %v1302_v36  ;;  %843 = vmatpush.msra.mxu3 %v1765_v37 }
  0xb4   : > { %v1775_v40 = vpop.permute.xlu1 %1319  ;;  %v1315_v41 = vpop.permute.xlu0 %1314 }
  0xb5   : > { %824 = vmatpush.msra.mxu2 %v1307_v39  ;;  %844 = vmatpush.msra.mxu3 %v1769_v38  ;;  %v1316_v42 = vunpack.i.l.bf16 %v1315_v41  ;;  %v1321_v45 = vunpack.i.l.bf16 %v1775_v40  ;;  %v1365_v54 = vpop.permute.xlu2 %1364  ;;  %v1830_v6 = vunpack.i.h.bf16 %v1315_v41  ;;  %v1840_v14 = vunpack.i.h.bf16 %v1775_v40 }
  0xb6   : > { %v1798_v56 = vunpack.i.h.bf16 %v1365_v54  ;;  %v1813_v2 = vunpack.i.l.bf16 %v1365_v54 }
  0xb7   : > { %777 = vmatpush.msra.mxu0 %v1316_v42  ;;  %825 = vmatpush.msra.mxu2 %v1311_v18 }
  0xb8   : > { %845 = vmatpush.msra.mxu3 %v1780_v44 }
  0xb9   : > { %778 = vmatpush.msra.mxu0 %v1321_v45  ;;  %826 = vmatpush.msra.mxu2 %v1316_v42 }
  0xba   : > { %846 = vmatpush.msra.mxu3 %v1783_v46 }
  0xbb   : > { %779 = vmatpush.msra.mxu0 %v1326_v47  ;;  %827 = vmatpush.msra.mxu2 %v1321_v45 }
  0xbc   : > { %847 = vmatpush.msra.mxu3 %v1787_v48  ;;  %v1335_v50 = vpop.permute.xlu1 %1334  ;;  %v1330_v51 = vpop.permute.xlu0 %1329 }
  0xbd   : > { %828 = vmatpush.msra.mxu2 %v1326_v47  ;;  %v1331_v52 = vunpack.i.l.bf16 %v1330_v51  ;;  %v1336_v53 = vunpack.i.l.bf16 %v1335_v50  ;;  %v1847_v16 = vpop.permute.xlu2 %1374  ;;  %v1855_v18 = vunpack.i.h.bf16 %v1330_v51  ;;  %v1859_v19 = vunpack.i.h.bf16 %v1335_v50 }
  0xbe   : > { %848 = vmatpush.msra.mxu3 %v1790_v49  ;;  %v1869_v24 = vunpack.i.l.bf16 %v1847_v16 }
  0xbf   : > { %780 = vmatpush.msra.mxu0 %v1331_v52  ;;  %829 = vmatpush.msra.mxu2 %v1331_v52 }
  0xc0   : > { %849 = vmatpush.msra.mxu3 %v1646_v1 }
  0xc1   : > { %781 = vmatpush.msra.mxu0 %v1336_v53  ;;  %830 = vmatpush.msra.mxu2 %v1336_v53 }
  0xc2   : > { %850 = vmatpush.msra.mxu3 %v1737_v27 }
  0xc3   : > { %782 = vmatpush.msra.mxu0 %v1655_v3  ;;  %831 = vmatpush.msra.mxu2 %v1655_v3  ;;  %v1820_v3 = vld [vmem:[#allocation5 + $0x8] sm:$0xff] }
  0xc4   : > { %v1805_v59 = vpop.permute.xlu1 %1349  ;;  %v1345_v60 = vpop.permute.xlu0 %1344  ;;  %832 = vmatmul.f32.vlgmr.msra.gmra.mxu2 %v1843_v15 }
  0xc5   : > { %921 = vmatpush.msrb.mxu2 %v1794_v55  ;;  %v1809_v61 = vunpack.i.l.bf16 %v1805_v59  ;;  %v1811_v62 = vunpack.i.l.bf16 %v1345_v60  ;;  %783 = vmatpush.msra.mxu0 %v1342_v57  ;;  %v1347_v63 = vunpack.i.h.bf16 %v1345_v60  ;;  %v230_v26 = vpop.permute.xlu2 %229  ;;  %v1352_v43 = vunpack.i.h.bf16 %v1805_v59 }
  0xc7   : > { %922 = vmatpush.msrb.mxu2 %v1798_v56  ;;  %802 = vmatpush.msra.mxu1 %v1811_v62 }
  0xc8   : > { %851 = vmatpush.msra.mxu3 %v1811_v62  ;;  %784 = vmatpush.msra.mxu0 %v1347_v63 }
  0xc9   : > { %923 = vmatpush.msrb.mxu2 %v1809_v61  ;;  %803 = vmatpush.msra.mxu1 %v1727_v21 }
  0xca   : > { %881 = vmatpush.msrb.mxu3 %v1803_v58 }
  0xcb   : > { %804 = vmatpush.msra.mxu1 %v1732_v25  ;;  %1180 = vmatmul.msk.f32.vlgmr.msra.gmra.mxu3 %vm772_vm0, %v1820_v3 }
  0xcc   : > { %882 = vmatpush.msrb.mxu3 %v1813_v2  ;;  %v242_v8 = vpop.permute.xlu1 %241  ;;  %v1832_v11 = vpop.permute.xlu0 %1359 }
  0xcd   : > { %v1836_v12 = vunpack.i.l.bf16 %v1832_v11  ;;  %785 = vmatpush.msra.mxu0 %v242_v8  ;;  %805 = vmatpush.msra.mxu1 %v1739_v28 }
  0xce   : > { %883 = vmatpush.msrb.mxu3 %v1824_v4 }
  0xcf   : > { %806 = vmatpush.msra.mxu1 %v1743_v29  ;;  %924 = vmatpush.msrb.mxu2 %v1836_v12 }
  0xd0   : > { %884 = vmatpush.msrb.mxu3 %v1830_v6 }
  0xd1   : > { %807 = vmatpush.msra.mxu1 %v1746_v30 }
  0xd2   : > { %885 = vmatpush.msrb.mxu3 %v1840_v14 }
  0xd3   : > { %808 = vmatpush.msra.mxu1 %v1753_v33 }
  0xd4   : > { %886 = vmatpush.msrb.mxu3 %v1850_v17  ;;  %v238_v20 = vpop.permute.xlu1 %237  ;;  %v1861_v23 = vpop.permute.xlu0 %1369 }
  0xd5   : > { %v1865_v22 = vunpack.i.l.bf16 %v1861_v23  ;;  %786 = vmatpush.msra.mxu0 %v238_v20  ;;  %809 = vmatpush.msra.mxu1 %v1644_v0 }
  0xd6   : > { %887 = vmatpush.msrb.mxu3 %v1855_v18 }
  0xd7   : > { %810 = vmatpush.msra.mxu1 %v1302_v36  ;;  %925 = vmatpush.msrb.mxu2 %v1865_v22  ;;  %v222_v36 = vpop.permute.xlu2 %221 }
  0xd8   : > { %888 = vmatpush.msrb.mxu3 %v1859_v19 }
  0xd9   : > { %811 = vmatpush.msra.mxu1 %v1307_v39  ;;  %926 = vmatpush.msrb.mxu2 %v1869_v24 }
  0xda   : > { %889 = vmatpush.msrb.mxu3 %v1660_v5  ;;  %1179 = vmatmul.msk.f32.vlgmr.msra.gmra.mxu1 %vm772_vm0, %v1820_v3 }
  0xdb   : > { %856 = vmatpush.msrb.mxu1 %v1765_v37 }
  0xdc   : > { %890 = vmatpush.msrb.mxu3 %v1756_v34  ;;  %v1883_v40 = vpop.permute.xlu1 %1379  ;;  %v234_v32 = vpop.permute.xlu0 %233 }
  0xdd   : > { %857 = vmatpush.msrb.mxu1 %v1769_v38  ;;  %v1888_v31 = vunpack.i.l.bf16 %v1883_v40  ;;  %787 = vmatpush.msra.mxu0 %v234_v32 }
  0xde   : > { %891 = vmatpush.msrb.mxu3 %v1760_v35 }
  0xdf   : > { %858 = vmatpush.msrb.mxu1 %v1780_v44  ;;  %1181 = vmatmul.msk.f32.vlgmr.msrb.gmra.mxu3 %vm772_vm0, %v1820_v3 }
  0xe0   : > { %936 = vmatpush.msra.mxu3 %v1809_v61  ;;  %788 = vmatpush.msra.mxu0 %v230_v26 }
  0xe1   : > { %927 = vmatpush.msrb.mxu2 %v1888_v31  ;;  %859 = vmatpush.msrb.mxu1 %v1783_v46 }
  0xe2   : > { %937 = vmatpush.msra.mxu3 %v1836_v12 }
  0xe3   : > { %860 = vmatpush.msrb.mxu1 %v1787_v48 }
  0xe4   : > { %938 = vmatpush.msra.mxu3 %v1865_v22  ;;  %v226_v39 = vpop.permute.xlu1 %225  ;;  %v1900_v41 = vpop.permute.xlu0 %1384 }
  0xe5   : > { %861 = vmatpush.msrb.mxu1 %v1790_v49  ;;  %v1904_v42 = vunpack.i.l.bf16 %v1900_v41  ;;  %789 = vmatpush.msra.mxu0 %v226_v39  ;;  %v1387_v47 = vunpack.i.h.bf16 %v1900_v41 }
  0xe6   : > { %939 = vmatpush.msra.mxu3 %v1869_v24 }
  0xe7   : > { %862 = vmatpush.msrb.mxu1 %v1646_v1  ;;  %790 = vmatpush.msra.mxu0 %v222_v36 }
  0xe8   : > { %940 = vmatpush.msra.mxu3 %v1888_v31  ;;  %928 = vmatpush.msrb.mxu2 %v1904_v42 }
  0xe9   : > { %863 = vmatpush.msrb.mxu1 %v1737_v27  ;;  %791 = vmatpush.msra.mxu0 %v1670_v7  ;;  %v1362_v7 = vunpack.i.h.bf16 %v1832_v11 }
  0xea   : > { %941 = vmatpush.msra.mxu3 %v1904_v42  ;;  %929 = vmatpush.msrb.mxu2 %v1676_v9 }
  0xeb   : > { %864 = vmatpush.msrb.mxu1 %v1811_v62  ;;  %896 = vmatpush.msrb.mxu0 %v1824_v4 }
  0xec   : > { %942 = vmatpush.msra.mxu3 %v1676_v9  ;;  %930 = vmatpush.msrb.mxu2 %v1803_v58  ;;  %v1934_v27 = vpop.permute.xlu0 %1389  ;;  %v1940_v45 = vpop.permute.xlu1 %1394 }
  0xed   : > { %865 = vmatpush.msrb.mxu1 %v1727_v21  ;;  %897 = vmatpush.msrb.mxu0 %v1830_v6  ;;  %v1372_v21 = vunpack.i.h.bf16 %v1861_v23 }
  0xee   : > { %943 = vmatpush.msra.mxu3 %v1803_v58  ;;  %931 = vmatpush.msrb.mxu2 %v1813_v2 }
  0xef   : > { %866 = vmatpush.msrb.mxu1 %v1732_v25  ;;  %898 = vmatpush.msrb.mxu0 %v1840_v14  ;;  %v1377_v25 = vunpack.i.h.bf16 %v1847_v16 }
  0xf0   : > { %944 = vmatpush.msra.mxu3 %v1813_v2  ;;  %976 = vmatpush.msra.mxu2 %v1352_v43 }
  0xf1   : > { %867 = vmatpush.msrb.mxu1 %v1739_v28  ;;  %899 = vmatpush.msrb.mxu0 %v1850_v17  ;;  %v1382_v28 = vunpack.i.h.bf16 %v1883_v40 }
  0xf2   : > { %945 = vmatpush.msra.mxu3 %v1824_v4  ;;  %977 = vmatpush.msra.mxu2 %v1362_v7 }
  0xf3   : > { %868 = vmatpush.msrb.mxu1 %v1743_v29  ;;  %900 = vmatpush.msrb.mxu0 %v1855_v18  ;;  %v1391_v29 = vunpack.i.l.bf16 %v1934_v27 }
  0xf4   : > { %946 = vmatpush.msra.mxu3 %v1830_v6  ;;  %978 = vmatpush.msra.mxu2 %v1372_v21 }
  0xf5   : > { %869 = vmatpush.msrb.mxu1 %v1746_v30  ;;  %901 = vmatpush.msrb.mxu0 %v1859_v19  ;;  %v1396_v30 = vunpack.i.l.bf16 %v1940_v45 }
  0xf6   : > { %947 = vmatpush.msra.mxu3 %v1840_v14  ;;  %979 = vmatpush.msra.mxu2 %v1377_v25 }
  0xf7   : > { %870 = vmatpush.msrb.mxu1 %v1753_v33  ;;  %902 = vmatpush.msrb.mxu0 %v1660_v5  ;;  %v1550_v33 = vmov 0  }
  0xf8   : > { %948 = vmatpush.msra.mxu3 %v1850_v17  ;;  %980 = vmatpush.msra.mxu2 %v1382_v28 }
  0xf9   : > { %871 = vmatpush.msrb.mxu1 %v1644_v0  ;;  %903 = vmatpush.msrb.mxu0 %v1756_v34  ;;  %v766_v0 = vld [vmem:[%s2046_s2] sm:$0xff]  ;;  %v1392_v34 = vunpack.i.h.bf16 %v1934_v27 }
  0xfa   : > { %949 = vmatpush.msra.mxu3 %v1855_v18  ;;  %981 = vmatpush.msra.mxu2 %v1387_v47 }
  0xfb   : > { %961 = vmatpush.msra.mxu1 %v1391_v29  ;;  %904 = vmatpush.msrb.mxu0 %v1760_v35  ;;  %v587_v35 = vpop.permute.xlu0 %586 }
  0xfc   : > { %950 = vmatpush.msra.mxu3 %v1859_v19  ;;  %982 = vmatpush.msra.mxu2 %v1678_v10 }
  0xfd   : > { %962 = vmatpush.msra.mxu1 %v1396_v30  ;;  %792 = vmatmul.f32.vlgmr.msra.gmra.mxu0 %v1843_v15 }
  0xfe   : > { %905 = vmatpush.msrb.mxu0 %v1765_v37  ;;  %983 = vmatpush.msra.mxu2 %v1794_v55  ;;  %v1397_v37 = vunpack.i.h.bf16 %v1940_v45 }
  0xff   : > { %963 = vmatpush.msra.mxu1 %v1352_v43  ;;  %1182 = vmatmul.msk.f32.vlgmr.msrb.gmra.mxu2 %vm772_vm0, %v1820_v3 }
 0x100   : > { %906 = vmatpush.msrb.mxu0 %v1769_v38  ;;  %984 = vmatpush.msra.mxu2 %v1798_v56  ;;  %v583_v38 = vpop.permute.xlu1 %582 }
 0x101   : > { %964 = vmatpush.msra.mxu1 %v1362_v7  ;;  %951 = vmatpush.msra.mxu3 %v1660_v5  ;;  %v591_v5 = vpop.permute.xlu2 %590 }
 0x102   : > { %907 = vmatpush.msrb.mxu0 %v1780_v44  ;;  %985 = vmatpush.msra.mxu2 %v1809_v61 }
 0x103   : > { %965 = vmatpush.msra.mxu1 %v1372_v21  ;;  %952 = vmatmul.f32.vlgmr.msra.gmra.mxu3 %v1843_v15 }
 0x104   : > { %908 = vmatpush.msrb.mxu0 %v1783_v46  ;;  %986 = vmatpush.msra.mxu2 %v1836_v12 }
 0x105   : > { %966 = vmatpush.msra.mxu1 %v1377_v25  ;;  %1398 = vset.pattern.permute.xlu2 %v1550_v33 }
 0x106   : > { %909 = vmatpush.msrb.mxu0 %v1787_v48  ;;  %987 = vmatpush.msra.mxu2 %v1865_v22 }
 0x107   : > { %967 = vmatpush.msra.mxu1 %v1382_v28  ;;  %769 = vperm.xlu2 %1398, %v766_v0  }
 0x108   : > { %910 = vmatpush.msrb.mxu0 %v1790_v49  ;;  %988 = vmatpush.msra.mxu2 %v1869_v24  ;;  %v571_v44 = vpop.permute.xlu1 %570 }
 0x109   : > { %968 = vmatpush.msra.mxu1 %v1387_v47  ;;  %1399 = vset.pattern.permute.xlu0 %v1550_v33 }
 0x10a   : > { %911 = vmatpush.msrb.mxu0 %v1646_v1  ;;  %989 = vmatpush.msra.mxu2 %v1888_v31  ;;  %v579_v1 = vpop.permute.xlu2 %578 }
 0x10b   : > { %969 = vmatpush.msra.mxu1 %v1678_v10  ;;  %912 = vmatmul.f32.vlgmr.msrb.gmra.mxu0 %v1843_v15  ;;  %v575_v10 = vpop.permute.xlu0 %574 }
 0x10c   : > { %1001 = vmatpush.msra.mxu0 %v1392_v34  ;;  %990 = vmatpush.msra.mxu2 %v1904_v42 }
 0x10d   : > { %872 = vmatmul.f32.vlgmr.msrb.gmra.mxu1 %v1843_v15 }
 0x10e   : > { %970 = vmatpush.msra.mxu1 %v1794_v55  ;;  %1002 = vmatpush.msra.mxu0 %v1397_v37 }
 0x10f   : > { %991 = vmatpush.msra.mxu2 %v1676_v9 }
 0x110   : > { %971 = vmatpush.msra.mxu1 %v1798_v56  ;;  %1003 = vmatpush.msra.mxu0 %v591_v5 }
 0x111   : > { %992 = vmatmul.f32.vlgmr.msra.gmra.mxu2 %v1843_v15 }
 0x112   : > { %1004 = vmatpush.msra.mxu0 %v587_v35 }
 0x114   : > { %1005 = vmatpush.msra.mxu0 %v583_v38 }
 0x115   : > { %1183 = vmatmul.msk.f32.vlgmr.msra.gmra.mxu1 %vm772_vm0, %v1820_v3 }
 0x116   : > { %1006 = vmatpush.msra.mxu0 %v579_v1 }
 0x118   : > { %1007 = vmatpush.msra.mxu0 %v575_v10 }
 0x11a   : > { %1008 = vmatpush.msra.mxu0 %v571_v44 }
 0x11c   : > { %1009 = vmatpush.msra.mxu0 %v1704_v13 }
 0x11e   : > { %1010 = vmatpush.msra.mxu0 %v1391_v29 }
 0x120   : > { %1011 = vmatpush.msra.mxu0 %v1396_v30 }
 0x121   : > { %1184 = vmatmul.msk.f32.vlgmr.msra.gmra.mxu0 %vm772_vm0, %v1820_v3 }
 0x147   : > { %v833_v9 = vpop.f32.mrf.mxu2 }
 0x14e   : > { %v853_v48 = vpop.f32.mrf.mxu3 }
 0x157   : > { %v813_v53 = vpop.f32.mrf.mxu1 }
 0x161   : > { %v770_v46 = vpop.permute.xlu2 %769 }
 0x162   : > { %v834_v49 = vadd.f32 %v833_v9, %v770_v46  ;;  %v893_v56 = vpop.f32.mrf.mxu3 }
 0x164   : > { %v854_v50 = vadd.f32 %v853_v48, %v834_v49 }
 0x166   : > { %v1017_v51 = vmax.f32 %v854_v50, 0.0 }
 0x168   : > { %1023 = vst [vmem:[%s1642_s30 + $0x8] sm:$0xff] %v1017_v51 }
 0x17a   : > { %v793_v52 = vpop.f32.mrf.mxu0 }
 0x17b   : > { %v794_v13 = vadd.f32 %v793_v52, %v770_v46 }
 0x17d   : > { %v814_v54 = vadd.f32 %v813_v53, %v794_v13 }
 0x17f   : > { %v1016_v55 = vmax.f32 %v814_v54, 0.0 }
 0x181   : > { %1022 = vst [vmem:[%s1642_s30] sm:$0xff] %v1016_v55 }
 0x182   : > { %v933_v59 = vpop.f32.mrf.mxu2 }
 0x186   : > { %v953_v61 = vpop.f32.mrf.mxu3 }
 0x187   : > { %v954_v4 = vadd.f32 %v953_v61, %v770_v46 }
 0x188   : > { %v913_v60 = vpop.f32.mrf.mxu0 }
 0x189   : > { %v914_v62 = vadd.f32 %v913_v60, %v770_v46 }
 0x18a   : > { %v873_v57 = vpop.f32.mrf.mxu1 }
 0x18b   : > { %v874_v58 = vadd.f32 %v873_v57, %v770_v46  ;;  %v934_v3 = vadd.f32 %v933_v59, %v914_v62 }
 0x18d   : > { %v894_v63 = vadd.f32 %v893_v56, %v874_v58  ;;  %v1019_v6 = vmax.f32 %v934_v3, 0.0 }
 0x18f   : > { %v1018_v2 = vmax.f32 %v894_v63, 0.0  ;;  %1025 = vst [vmem:[%s1642_s30 + $0x18] sm:$0xff] %v1019_v6 }
 0x191   : > { %1024 = vst [vmem:[%s1642_s30 + $0x10] sm:$0xff] %v1018_v2 }
 0x192   : > { %v973_v8 = vpop.f32.mrf.mxu1 }
 0x193   : > { %v974_v11 = vadd.f32 %v973_v8, %v954_v4 }
 0x194   : > { %v993_v14 = vpop.f32.mrf.mxu2 }
 0x195   : > { %v1020_v12 = vmax.f32 %v974_v11, 0.0  ;;  %v994_v15 = vadd.f32 %v993_v14, %v770_v46 }
 0x197   : > { %1026 = vst [vmem:[%s1642_s30 + $0x20] sm:$0xff] %v1020_v12 }
 0x19e   : > { %v1013_v16 = vpop.f32.mrf.mxu0 }
 0x19f   : > { %v1014_v17 = vadd.f32 %v1013_v16, %v994_v15 }
 0x1a1   : > { %v1021_v18 = vmax.f32 %v1014_v17, 0.0 }
 0x1a3   : > { %1027 = vst [vmem:[%s1642_s30 + $0x28] sm:$0xff] %v1021_v18 }
 0x1a4   : > { %1481 = shalt.err (!%p1478_p13)
}
 0x1a5   : > { %1196 = dma.vmem_to_hbm [thread:$0]  (%p1611_p4), %s1045_s29, 768, %s1047_s5, %s1029_s7  }
 0x1a6 PF: > { %p1208_p0 = scmp.ge.s32.totalorder %s1538_s17, 2  ;;  %s1058_s4 = sand.u32 1, %s1518_s12  }
 0x1a7   : > { %s1059_s30 = scalar_lea.sflag [#allocation7], %s1058_s4 }
 0x1a8   : > { %p1203_p1 = pnand %p1208_p0, %p1618_p8 }
 0x1aa   : > { %p1204_p2 = pneg %p1203_p1 }
 0x1ac   : > { %1513 = dma.done.wait (%p1204_p2), %s1059_s30, 768  }
 0x1ad   : > { %1515 = vsyncadd (%p1204_p2), %s1059_s30, 4294966528  ;;  %s17_s17 = sadd.s32 1, %s1538_s17   ;;  %s2050_s12 = smov %s1522_s13 }
 0x1ae   : > { %p14_p3 = scmp.ge.s32.totalorder %s17_s17, 4   ;;  %s2051_s13 = smov %s1526_s14 }
 0x1af   : > { %s2052_s14 = smov %s1624_s25  ;;  %s2053_s15 = smov %s1534_s16 }
 0x1b0   : > { %s2054_s16 = smov %s2056_s20  ;;  %16 = sbr.rel (!%p14_p3) target bundleno = 5 (0x5), region = 95 }
 0x1b5   :  { %1065 = vsyncpa [#allocation6], 1 }
 0x1b6   :  { %1067 = vsyncpa [#allocation6 + $0x1], 1 }
 0x1b7   :  { %1068 = vsyncpa [#allocation7], 1 }
 0x1b8   :  { %1070 = vsyncpa [#allocation7 + $0x1], 1 }
 0x1b9   :  { %1071 = vsyncmov [#allocation4] }
 0x1bc   :  { %s1072_s22 = vpop.sfrf %1071 }
 0x1bd   :  { %p1188_p4 = scmp.ne.s32.totalorder %s1072_s22, 0 }
 0x1bf   :  { %1076 = shalt.err (%p1188_p4)  }
 0x1c0   :  { %1078 = vsyncmov [#allocation4 + $0x1] }
 0x1c3   :  { %s1079_s24 = vpop.sfrf %1078 }
 0x1c4   :  { %p1189_p8 = scmp.ne.s32.totalorder %s1079_s24, 0 }
 0x1c6   :  { %1083 = shalt.err (%p1189_p8)  }

</bundles_post_ra>
